<compile_context>
chip_gen: v7x
topology: tpu7x:2x2x1
jax: 0.10.0
libtpu: 0.0.40
codegen_flags: <defaults>
</compile_context>

<pallas_src>
import functools

import jax
import jax.numpy as jnp
import numpy as np
from jax import lax
from jax.experimental import pallas as pl
from jax.experimental.pallas import tpu as pltpu

LANE = 128  # TPU lane width (last-dim alignment target)


def _round_up(x, m):
    return (x + m - 1) // m * m


def _nbytes(x):
    return int(x.size) * x.dtype.itemsize


# ----------------------------- Pallas kernels ------------------------------ #

def _mm_bn_kernel(a_ref, w_ref, s_ref, b_ref, o_ref, *, relu):
    """(TM,K)@(K,C) on the MXU -> folded-BN affine -> optional ReLU."""
    acc = jnp.dot(a_ref[...], w_ref[...], preferred_element_type=jnp.float32)
    y = acc * s_ref[...] + b_ref[...]
    if relu:
        y = jnp.maximum(y, 0.0)
    o_ref[...] = y.astype(o_ref.dtype)


def _mm_bn_add_relu_kernel(a_ref, w_ref, s_ref, b_ref, r_ref, o_ref):
    """matmul + folded BN + identity-residual add + ReLU, fused."""
    acc = jnp.dot(a_ref[...], w_ref[...], preferred_element_type=jnp.float32)
    y = acc * s_ref[...] + b_ref[...] + r_ref[...].astype(jnp.float32)
    o_ref[...] = jnp.maximum(y, 0.0).astype(o_ref.dtype)


def _mm_bn_scconv_relu_kernel(a_ref, w_ref, s_ref, b_ref,
                              sc_ref, wsc_ref, ss_ref, sb_ref, o_ref):
    """main matmul + BN, plus fused 1x1-shortcut matmul + BN, add, ReLU."""
    acc = jnp.dot(a_ref[...], w_ref[...], preferred_element_type=jnp.float32)
    y = acc * s_ref[...] + b_ref[...]
    res = jnp.dot(sc_ref[...], wsc_ref[...], preferred_element_type=jnp.float32)
    res = res * ss_ref[...] + sb_ref[...]
    o_ref[...] = jnp.maximum(y + res, 0.0).astype(o_ref.dtype)


# --------------------------- fused matmul wrapper --------------------------- #

def _fused_matmul_bn(a, w, scale, bias, *, relu=True, residual=None,
                     sc=None, w_sc=None, sc_scale=None, sc_bias=None,
                     out_dtype=jnp.float32, tm=512):
    """y = [relu]((A@W)*scale + bias [+ residual | + (SC@Wsc)*sc_scale + sc_bias])

    A:(M,K) bf16, W:(K,Cp) bf16, scale/bias:(Cp,) f32, residual:(M,Cp),
    SC:(M,Ksc) bf16, Wsc:(Ksc,Cp) bf16.  Tiled over M; W/scale/bias resident.
    """
    M, K = a.shape
    Cp = w.shape[1]
    tm = min(tm, _round_up(M, 16))         # 16-aligned sublanes (bf16-safe)
    grid = (pl.cdiv(M, tm),)

    def row_spec(cols):
        return pl.BlockSpec((tm, cols), lambda i: (i, 0))

    def resident(shape):
        n = len(shape)
        return pl.BlockSpec(shape, lambda i, _n=n: (0,) * _n)

    in_specs = [row_spec(K), resident((K, Cp)),
                resident((1, Cp)), resident((1, Cp))]
    args = [a, w,
            scale.reshape(1, Cp).astype(jnp.float32),
            bias.reshape(1, Cp).astype(jnp.float32)]

    flops = 2 * M * K * Cp
    bytes_accessed = _nbytes(a) + _nbytes(w) + M * Cp * jnp.dtype(out_dtype).itemsize

    if sc is not None:
        kernel = _mm_bn_scconv_relu_kernel
        Ksc = sc.shape[1]
        in_specs += [row_spec(Ksc), resident((Ksc, Cp)),
                     resident((1, Cp)), resident((1, Cp))]
        args += [sc, w_sc,
                 sc_scale.reshape(1, Cp).astype(jnp.float32),
                 sc_bias.reshape(1, Cp).astype(jnp.float32)]
        flops += 2 * M * Ksc * Cp
        bytes_accessed += _nbytes(sc) + _nbytes(w_sc)
    elif residual is not None:
        kernel = _mm_bn_add_relu_kernel
        in_specs.append(row_spec(Cp))
        args.append(residual)
        bytes_accessed += _nbytes(residual)
    else:
        kernel = functools.partial(_mm_bn_kernel, relu=relu)

    return pl.pallas_call(
        kernel,
        out_shape=jax.ShapeDtypeStruct((M, Cp), out_dtype),
        grid=grid,
        in_specs=in_specs,
        out_specs=row_spec(Cp),
        compiler_params=pltpu.CompilerParams(
            dimension_semantics=("parallel",)),
        cost_estimate=pl.CostEstimate(flops=flops, transcendentals=0,
                                      bytes_accessed=bytes_accessed),
    )(*args)


# ------------------------------- JAX glue ---------------------------------- #

def _im2col_3x3(x_nhwc, stride, k_align=LANE):
    """3x3 patches, padding=1 -> (N*Ho*Wo, Kp). K order = (kh, kw, c); the
    zero-padding up to Kp = round_up(9*C, k_align) is folded into the concat."""
    N, H, W, C = x_nhwc.shape
    xp = jnp.pad(x_nhwc, ((0, 0), (1, 1), (1, 1), (0, 0)))
    Ho = (H + 2 - 3) // stride + 1
    Wo = (W + 2 - 3) // stride + 1
    cols = []
    for kh in range(3):
        for kw in range(3):
            sl = xp[:, kh::stride, kw::stride, :][:, :Ho, :Wo, :]
            cols.append(sl)
    K = 9 * C
    Kp = _round_up(K, k_align)
    if Kp > K:
        cols.append(jnp.zeros((N, Ho, Wo, Kp - K), x_nhwc.dtype))
    patches = jnp.concatenate(cols, axis=-1)            # (N, Ho, Wo, Kp)
    return patches.reshape(N * Ho * Wo, Kp), (N, Ho, Wo)


def _bn_fold(gamma, beta, mean, var, eps=1e-5):
    scale = gamma / jnp.sqrt(var + eps)
    return scale, beta - mean * scale


def _pad1(v, n):
    return jnp.pad(v, (0, n - v.shape[0]))


@functools.partial(jax.jit, static_argnums=2)
def basic_block_forward(x_nchw, params, stride):
    """ResNet BasicBlock forward. Input/output: NCHW float32."""
    x = jnp.transpose(x_nchw, (0, 2, 3, 1)).astype(jnp.float32)   # -> NHWC
    N, H, W, Cin = x.shape
    Cout = params["conv1_w"].shape[0]
    Cinp = _round_up(Cin, LANE)
    Coutp = _round_up(Cout, LANE)

    # Folded inference-mode BN affines, zero-padded to lane width: padded output
    # channels come out exactly 0 in every kernel and are sliced off at the end.
    s1, b1 = _bn_fold(params["bn1_gamma"], params["bn1_beta"],
                      params["bn1_mean"], params["bn1_var"])
    s2, b2 = _bn_fold(params["bn2_gamma"], params["bn2_beta"],
                      params["bn2_mean"], params["bn2_var"])
    s1, b1 = _pad1(s1, Coutp), _pad1(b1, Coutp)
    s2, b2 = _pad1(s2, Coutp), _pad1(b2, Coutp)

    # --- conv1 -> bn1 -> relu ---------------------------------------------- #
    K1 = 9 * Cin
    K1p = _round_up(K1, LANE)
    w1 = jnp.transpose(params["conv1_w"], (2, 3, 1, 0)).reshape(K1, Cout)
    w1 = jnp.pad(w1, ((0, K1p - K1), (0, Coutp - Cout))).astype(jnp.bfloat16)

    a1, (_, Ho, Wo) = _im2col_3x3(x.astype(jnp.bfloat16), stride)
    M = N * Ho * Wo
    out1 = _fused_matmul_bn(a1, w1, s1, b1, relu=True,
                            out_dtype=jnp.bfloat16)               # (M, Coutp) bf16
    out1_nhwc = out1.reshape(N, Ho, Wo, Coutp)

    # --- conv2 -> bn2 -> (+ shortcut) -> relu ------------------------------ #
    # conv2 weight: pad its input-channel axis to Coutp so the (kh, kw, c) K order
    # matches the im2col of the channel-padded out1 (K2 = 9*Coutp, 128-aligned).
    w2 = jnp.transpose(params["conv2_w"], (2, 3, 1, 0))           # (3,3,Cin2,Cout)
    w2 = jnp.pad(w2, ((0, 0), (0, 0), (0, Coutp - Cout), (0, Coutp - Cout)))
    w2 = w2.reshape(9 * Coutp, Coutp).astype(jnp.bfloat16)

    a2, _ = _im2col_3x3(out1_nhwc, 1)

    if stride != 1 or Cin != Cout:
        # 1x1 strided shortcut conv + BN, fused into conv2's kernel epilogue.
        ss, sb = _bn_fold(params["sc_bn_gamma"], params["sc_bn_beta"],
                          params["sc_bn_mean"], params["sc_bn_var"])
        ss, sb = _pad1(ss, Coutp), _pad1(sb, Coutp)
        sc = x[:, ::stride, ::stride, :][:, :Ho, :Wo, :]
        sc = jnp.pad(sc, ((0, 0), (0, 0), (0, 0), (0, Cinp - Cin)))
        sc = sc.astype(jnp.bfloat16).reshape(M, Cinp)
        w_sc = jnp.pad(params["sc_w"].reshape(Cout, Cin).T,
                       ((0, Cinp - Cin), (0, Coutp - Cout))).astype(jnp.bfloat16)
        out2 = _fused_matmul_bn(a2, w2, s2, b2,
                                sc=sc, w_sc=w_sc, sc_scale=ss, sc_bias=sb)
    else:
        # Identity shortcut: fused residual add (f32, exact).
        res = jnp.pad(x, ((0, 0), (0, 0), (0, 0), (0, Coutp - Cin)))
        out2 = _fused_matmul_bn(a2, w2, s2, b2,
                                residual=res.reshape(M, Coutp))

    out = out2[:, :Cout].reshape(N, Ho, Wo, Cout)
    return jnp.transpose(out, (0, 3, 1, 2))                       # -> NCHW


# --------------------------- pure-JAX reference ----------------------------- #

def _reference(x, params, stride, in_c, out_c):
    def conv(x, w, s, p):
        return lax.conv_general_dilated(
            x, w, (s, s), [(p, p), (p, p)],
            dimension_numbers=("NCHW", "OIHW", "NCHW"),
            precision=lax.Precision.HIGHEST)

    def bn(x, g, b, m, v, eps=1e-5):
        r = lambda t: t.reshape(1, -1, 1, 1)
        return (x - r(m)) / jnp.sqrt(r(v) + eps) * r(g) + r(b)

    out = jax.nn.relu(bn(conv(x, params["conv1_w"], stride, 1),
                         params["bn1_gamma"], params["bn1_beta"],
                         params["bn1_mean"], params["bn1_var"]))
    out = bn(conv(out, params["conv2_w"], 1, 1),
             params["bn2_gamma"], params["bn2_beta"],
             params["bn2_mean"], params["bn2_var"])
    if stride != 1 or in_c != out_c:
        sc = bn(conv(x, params["sc_w"], stride, 0),
                params["sc_bn_gamma"], params["sc_bn_beta"],
                params["sc_bn_mean"], params["sc_bn_var"])
    else:
        sc = x
    return jax.nn.relu(out + sc)


# ---------------------------------- main ------------------------------------ #

def _make_params(key, in_c, out_c, with_shortcut):
    ks = jax.random.split(key, 16)
    p = {
        "conv1_w": 0.1 * jax.random.normal(ks[0], (out_c, in_c, 3, 3), jnp.float32),
        "bn1_gamma": jax.random.uniform(ks[1], (out_c,), jnp.float32, 0.8, 1.2),
        "bn1_beta": 0.1 * jax.random.normal(ks[2], (out_c,), jnp.float32),
        "bn1_mean": 0.1 * jax.random.normal(ks[3], (out_c,), jnp.float32),
        "bn1_var": jax.random.uniform(ks[4], (out_c,), jnp.float32, 0.5, 1.5),
        "conv2_w": 0.1 * jax.random.normal(ks[5], (out_c, out_c, 3, 3), jnp.float32),
        "bn2_gamma": jax.random.uniform(ks[6], (out_c,), jnp.float32, 0.8, 1.2),
        "bn2_beta": 0.1 * jax.random.normal(ks[7], (out_c,), jnp.float32),
        "bn2_mean": 0.1 * jax.random.normal(ks[8], (out_c,), jnp.float32),
        "bn2_var": jax.random.uniform(ks[9], (out_c,), jnp.float32, 0.5, 1.5),
    }
    if with_shortcut:
        p.update({
            "sc_w": 0.1 * jax.random.normal(ks[10], (out_c, in_c, 1, 1), jnp.float32),
            "sc_bn_gamma": jax.random.uniform(ks[11], (out_c,), jnp.float32, 0.8, 1.2),
            "sc_bn_beta": 0.1 * jax.random.normal(ks[12], (out_c,), jnp.float32),
            "sc_bn_mean": 0.1 * jax.random.normal(ks[13], (out_c,), jnp.float32),
            "sc_bn_var": jax.random.uniform(ks[14], (out_c,), jnp.float32, 0.5, 1.5),
        })
    return p, ks[15]


if __name__ == "__main__":
    key = jax.random.PRNGKey(0)
    k1, k2 = jax.random.split(key)

    # bf16 MXU inputs (f32 accumulation) vs f32 reference -> loosened tolerance.
    RTOL = ATOL = 5e-2

    # Config A: stride-2 downsample block (exercises the fused 1x1-conv shortcut).
    N, in_c, out_c, H, W, stride = 2, 4, 8, 16, 16, 2
    params, kx = _make_params(k1, in_c, out_c, with_shortcut=True)
    x = jax.random.normal(kx, (N, in_c, H, W), jnp.float32)
    y = jax.block_until_ready(basic_block_forward(x, params, stride))
    y_ref = jax.block_until_ready(_reference(x, params, stride, in_c, out_c))
    np.testing.assert_allclose(np.asarray(y), np.asarray(y_ref), rtol=RTOL, atol=ATOL)

    # Config B: stride-1 identity block (exercises the fused residual add).
    N, in_c, out_c, H, W, stride = 2, 8, 8, 16, 16, 1
    params, kx = _make_params(k2, in_c, out_c, with_shortcut=False)
    x = jax.random.normal(kx, (N, in_c, H, W), jnp.float32)
    y = jax.block_until_ready(basic_block_forward(x, params, stride))
    y_ref = jax.block_until_ready(_reference(x, params, stride, in_c, out_c))
    np.testing.assert_allclose(np.asarray(y), np.asarray(y_ref), rtol=RTOL, atol=ATOL)

    print("KERNEL_OK")
</pallas_src>

<mosaic_0001>
module attributes {stable_mosaic.version = 11 : i64} {
  func.func @_mm_bn_kernel(%arg0: i32, %arg1: memref<128x128xbf16, #tpu.memory_space<vmem>>, %arg2: memref<128x128xbf16, #tpu.memory_space<vmem>>, %arg3: memref<1x128xf32, #tpu.memory_space<vmem>>, %arg4: memref<1x128xf32, #tpu.memory_space<vmem>>, %arg5: memref<128x128xbf16, #tpu.memory_space<vmem>>) attributes {dimension_semantics = [#tpu.dimension_semantics<parallel>], iteration_bounds = array<i64: 1>, scalar_prefetch = 0 : i64, scratch_operands = 0 : i64, tpu.core_type = #tpu.core_type<tc>, window_params = [{transform_indices = @transform_0, window_bounds = array<i64: 128, 128>}, {pipeline_mode = #tpu.pipeline_mode<synchronous>, transform_indices = @transform_1, window_bounds = array<i64: 128, 128>}, {pipeline_mode = #tpu.pipeline_mode<synchronous>, transform_indices = @transform_2, window_bounds = array<i64: 1, 128>}, {pipeline_mode = #tpu.pipeline_mode<synchronous>, transform_indices = @transform_3, window_bounds = array<i64: 1, 128>}, {transform_indices = @transform_4, window_bounds = array<i64: 128, 128>}]} {
    %c0 = arith.constant 0 : index
    %c0_0 = arith.constant 0 : index
    %0 = vector.load %arg1[%c0, %c0_0] : memref<128x128xbf16, #tpu.memory_space<vmem>>, vector<128x128xbf16>
    %c0_1 = arith.constant 0 : index
    %c0_2 = arith.constant 0 : index
    %1 = vector.load %arg2[%c0_1, %c0_2] : memref<128x128xbf16, #tpu.memory_space<vmem>>, vector<128x128xbf16>
    %cst = arith.constant dense<0.000000e+00> : vector<128x128xf32>
    %2 = tpu.matmul %0, %1, %cst {dimension_numbers = #tpu.dot_dimension_numbers<[1], [0], [0], [1], [0, 0, 1, 1], [], []>} : vector<128x128xbf16>, vector<128x128xbf16>, vector<128x128xf32> -> vector<128x128xf32>
    %c0_3 = arith.constant 0 : index
    %c0_4 = arith.constant 0 : index
    %3 = vector.load %arg3[%c0_3, %c0_4] : memref<1x128xf32, #tpu.memory_space<vmem>>, vector<1x128xf32>
    %4 = vector.broadcast %3 : vector<1x128xf32> to vector<128x128xf32>
    %5 = arith.mulf %2, %4 : vector<128x128xf32>
    %c0_5 = arith.constant 0 : index
    %c0_6 = arith.constant 0 : index
    %6 = vector.load %arg4[%c0_5, %c0_6] : memref<1x128xf32, #tpu.memory_space<vmem>>, vector<1x128xf32>
    %7 = vector.broadcast %6 : vector<1x128xf32> to vector<128x128xf32>
    %8 = arith.addf %5, %7 : vector<128x128xf32>
    %cst_7 = arith.constant 0.000000e+00 : f32
    %9 = vector.broadcast %cst_7 : f32 to vector<128x128xf32>
    %10 = arith.maximumf %8, %9 : vector<128x128xf32>
    %11 = arith.truncf %10 : vector<128x128xf32> to vector<128x128xbf16>
    %c0_8 = arith.constant 0 : index
    %c0_9 = arith.constant 0 : index
    %12 = vector.load %arg5[%c0_8, %c0_9] : memref<128x128xbf16, #tpu.memory_space<vmem>>, vector<128x128xbf16>
    tpu.vector_store %arg5[%c0_8, %c0_9], %11 {strides = array<i32>} : memref<128x128xbf16, #tpu.memory_space<vmem>>, vector<128x128xbf16>,
    return
  }
  func.func @transform_0(%arg0: i32) -> (i32, i32) {
    %c0_i32 = arith.constant 0 : i32
    %c0_i32_0 = arith.constant 0 : i32
    return %arg0, %c0_i32 : i32, i32
  }
  func.func @transform_1(%arg0: i32) -> (i32, i32) {
    %c0_i32 = arith.constant 0 : i32
    %c0_i32_0 = arith.constant 0 : i32
    %c0_i32_1 = arith.constant 0 : i32
    return %c0_i32, %c0_i32_0 : i32, i32
  }
  func.func @transform_2(%arg0: i32) -> (i32, i32) {
    %c0_i32 = arith.constant 0 : i32
    %c0_i32_0 = arith.constant 0 : i32
    %c0_i32_1 = arith.constant 0 : i32
    return %c0_i32, %c0_i32_0 : i32, i32
  }
  func.func @transform_3(%arg0: i32) -> (i32, i32) {
    %c0_i32 = arith.constant 0 : i32
    %c0_i32_0 = arith.constant 0 : i32
    %c0_i32_1 = arith.constant 0 : i32
    return %c0_i32, %c0_i32_0 : i32, i32
  }
  func.func @transform_4(%arg0: i32) -> (i32, i32) {
    %c0_i32 = arith.constant 0 : i32
    %c0_i32_0 = arith.constant 0 : i32
    return %arg0, %c0_i32 : i32, i32
  }
}

module attributes {stable_mosaic.version = 11 : i64} {
  func.func @_mm_bn_scconv_relu_kernel(%arg0: i32, %arg1: memref<128x1152xbf16, #tpu.memory_space<vmem>>, %arg2: memref<1152x128xbf16, #tpu.memory_space<vmem>>, %arg3: memref<1x128xf32, #tpu.memory_space<vmem>>, %arg4: memref<1x128xf32, #tpu.memory_space<vmem>>, %arg5: memref<128x128xbf16, #tpu.memory_space<vmem>>, %arg6: memref<128x128xbf16, #tpu.memory_space<vmem>>, %arg7: memref<1x128xf32, #tpu.memory_space<vmem>>, %arg8: memref<1x128xf32, #tpu.memory_space<vmem>>, %arg9: memref<128x128xf32, #tpu.memory_space<vmem>>) attributes {dimension_semantics = [#tpu.dimension_semantics<parallel>], iteration_bounds = array<i64: 1>, scalar_prefetch = 0 : i64, scratch_operands = 0 : i64, tpu.core_type = #tpu.core_type<tc>, window_params = [{transform_indices = @transform_0, window_bounds = array<i64: 128, 1152>}, {pipeline_mode = #tpu.pipeline_mode<synchronous>, transform_indices = @transform_1, window_bounds = array<i64: 1152, 128>}, {pipeline_mode = #tpu.pipeline_mode<synchronous>, transform_indices = @transform_2, window_bounds = array<i64: 1, 128>}, {pipeline_mode = #tpu.pipeline_mode<synchronous>, transform_indices = @transform_3, window_bounds = array<i64: 1, 128>}, {transform_indices = @transform_4, window_bounds = array<i64: 128, 128>}, {pipeline_mode = #tpu.pipeline_mode<synchronous>, transform_indices = @transform_5, window_bounds = array<i64: 128, 128>}, {pipeline_mode = #tpu.pipeline_mode<synchronous>, transform_indices = @transform_6, window_bounds = array<i64: 1, 128>}, {pipeline_mode = #tpu.pipeline_mode<synchronous>, transform_indices = @transform_7, window_bounds = array<i64: 1, 128>}, {transform_indices = @transform_8, window_bounds = array<i64: 128, 128>}]} {
    %c0 = arith.constant 0 : index
    %c0_0 = arith.constant 0 : index
    %0 = vector.load %arg1[%c0, %c0_0] : memref<128x1152xbf16, #tpu.memory_space<vmem>>, vector<128x1152xbf16>
    %c0_1 = arith.constant 0 : index
    %c0_2 = arith.constant 0 : index
    %1 = vector.load %arg2[%c0_1, %c0_2] : memref<1152x128xbf16, #tpu.memory_space<vmem>>, vector<1152x128xbf16>
    %cst = arith.constant dense<0.000000e+00> : vector<128x128xf32>
    %2 = tpu.matmul %0, %1, %cst {dimension_numbers = #tpu.dot_dimension_numbers<[1], [0], [0], [1], [0, 0, 1, 1], [], []>} : vector<128x1152xbf16>, vector<1152x128xbf16>, vector<128x128xf32> -> vector<128x128xf32>
    %c0_3 = arith.constant 0 : index
    %c0_4 = arith.constant 0 : index
    %3 = vector.load %arg3[%c0_3, %c0_4] : memref<1x128xf32, #tpu.memory_space<vmem>>, vector<1x128xf32>
    %4 = vector.broadcast %3 : vector<1x128xf32> to vector<128x128xf32>
    %5 = arith.mulf %2, %4 : vector<128x128xf32>
    %c0_5 = arith.constant 0 : index
    %c0_6 = arith.constant 0 : index
    %6 = vector.load %arg4[%c0_5, %c0_6] : memref<1x128xf32, #tpu.memory_space<vmem>>, vector<1x128xf32>
    %7 = vector.broadcast %6 : vector<1x128xf32> to vector<128x128xf32>
    %8 = arith.addf %5, %7 : vector<128x128xf32>
    %c0_7 = arith.constant 0 : index
    %c0_8 = arith.constant 0 : index
    %9 = vector.load %arg5[%c0_7, %c0_8] : memref<128x128xbf16, #tpu.memory_space<vmem>>, vector<128x128xbf16>
    %c0_9 = arith.constant 0 : index
    %c0_10 = arith.constant 0 : index
    %10 = vector.load %arg6[%c0_9, %c0_10] : memref<128x128xbf16, #tpu.memory_space<vmem>>, vector<128x128xbf16>
    %cst_11 = arith.constant dense<0.000000e+00> : vector<128x128xf32>
    %11 = tpu.matmul %9, %10, %cst_11 {dimension_numbers = #tpu.dot_dimension_numbers<[1], [0], [0], [1], [0, 0, 1, 1], [], []>} : vector<128x128xbf16>, vector<128x128xbf16>, vector<128x128xf32> -> vector<128x128xf32>
    %c0_12 = arith.constant 0 : index
    %c0_13 = arith.constant 0 : index
    %12 = vector.load %arg7[%c0_12, %c0_13] : memref<1x128xf32, #tpu.memory_space<vmem>>, vector<1x128xf32>
    %13 = vector.broadcast %12 : vector<1x128xf32> to vector<128x128xf32>
    %14 = arith.mulf %11, %13 : vector<128x128xf32>
    %c0_14 = arith.constant 0 : index
    %c0_15 = arith.constant 0 : index
    %15 = vector.load %arg8[%c0_14, %c0_15] : memref<1x128xf32, #tpu.memory_space<vmem>>, vector<1x128xf32>
    %16 = vector.broadcast %15 : vector<1x128xf32> to vector<128x128xf32>
    %17 = arith.addf %14, %16 : vector<128x128xf32>
    %18 = arith.addf %8, %17 : vector<128x128xf32>
    %cst_16 = arith.constant 0.000000e+00 : f32
    %19 = vector.broadcast %cst_16 : f32 to vector<128x128xf32>
    %20 = arith.maximumf %18, %19 : vector<128x128xf32>
    %c0_17 = arith.constant 0 : index
    %c0_18 = arith.constant 0 : index
    %21 = vector.load %arg9[%c0_17, %c0_18] : memref<128x128xf32, #tpu.memory_space<vmem>>, vector<128x128xf32>
    tpu.vector_store %arg9[%c0_17, %c0_18], %20 {strides = array<i32>} : memref<128x128xf32, #tpu.memory_space<vmem>>, vector<128x128xf32>,
    return
  }
  func.func @transform_0(%arg0: i32) -> (i32, i32) {
    %c0_i32 = arith.constant 0 : i32
    %c0_i32_0 = arith.constant 0 : i32
    return %arg0, %c0_i32 : i32, i32
  }
  func.func @transform_1(%arg0: i32) -> (i32, i32) {
    %c0_i32 = arith.constant 0 : i32
    %c0_i32_0 = arith.constant 0 : i32
    %c0_i32_1 = arith.constant 0 : i32
    return %c0_i32, %c0_i32_0 : i32, i32
  }
  func.func @transform_2(%arg0: i32) -> (i32, i32) {
    %c0_i32 = arith.constant 0 : i32
    %c0_i32_0 = arith.constant 0 : i32
    %c0_i32_1 = arith.constant 0 : i32
    return %c0_i32, %c0_i32_0 : i32, i32
  }
  func.func @transform_3(%arg0: i32) -> (i32, i32) {
    %c0_i32 = arith.constant 0 : i32
    %c0_i32_0 = arith.constant 0 : i32
    %c0_i32_1 = arith.constant 0 : i32
    return %c0_i32, %c0_i32_0 : i32, i32
  }
  func.func @transform_4(%arg0: i32) -> (i32, i32) {
    %c0_i32 = arith.constant 0 : i32
    %c0_i32_0 = arith.constant 0 : i32
    return %arg0, %c0_i32 : i32, i32
  }
  func.func @transform_5(%arg0: i32) -> (i32, i32) {
    %c0_i32 = arith.constant 0 : i32
    %c0_i32_0 = arith.constant 0 : i32
    %c0_i32_1 = arith.constant 0 : i32
    return %c0_i32, %c0_i32_0 : i32, i32
  }
  func.func @transform_6(%arg0: i32) -> (i32, i32) {
    %c0_i32 = arith.constant 0 : i32
    %c0_i32_0 = arith.constant 0 : i32
    %c0_i32_1 = arith.constant 0 : i32
    return %c0_i32, %c0_i32_0 : i32, i32
  }
  func.func @transform_7(%arg0: i32) -> (i32, i32) {
    %c0_i32 = arith.constant 0 : i32
    %c0_i32_0 = arith.constant 0 : i32
    %c0_i32_1 = arith.constant 0 : i32
    return %c0_i32, %c0_i32_0 : i32, i32
  }
  func.func @transform_8(%arg0: i32) -> (i32, i32) {
    %c0_i32 = arith.constant 0 : i32
    %c0_i32_0 = arith.constant 0 : i32
    return %arg0, %c0_i32 : i32, i32
  }
}

</mosaic_0001>

<bundles_post_ra>
// kernel: basic_block_forward.2
= control target key start
LH: loop header
LB: loop body
LE: loop exit
PB: predicated region body
PF: predicated region fallthrough
CT: control target
= control target key end

     0   :  { %s687_s1 = inlined_call_operand.vmem [shape: bf16[128,128], index: 1, kind: input, shape index: {}]   ;;  %s688_s0 = inlined_call_operand.vmem [shape: bf16[128,128], index: 0, kind: input, shape index: {}]   ;;  %s689_s2 = inlined_call_operand.vmem [shape: f32[1,128], index: 2, kind: input, shape index: {}]   ;;  %s690_s3 = inlined_call_operand.vmem [shape: f32[1,128], index: 3, kind: input, shape index: {}]   ;;  %s691_s4 = inlined_call_operand.vmem [shape: bf16[128,128], index: 4, kind: output, shape index: {}]  }
   0x1   :  { %v550_v0 = vld [vmem:[%s687_s1] sm:$0xff]   ;;  %v551_v1 = vld [vmem:[%s687_s1 + $0x8] sm:$0xff]   ;;  %v552_v2 = vld [vmem:[%s687_s1 + $0x10] sm:$0xff]  }
   0x2   :  { %502 = vmatprep.subr.bf16.mxu0 %v550_v0  ;;  %534 = vmatprep.subr.bf16.mxu1 %v550_v0  ;;  %v553_v3 = vld [vmem:[%s687_s1 + $0x18] sm:$0xff]   ;;  %v558_v4 = vld [vmem:[%s688_s0] sm:$0xff]   ;;  %v555_v7 = vld [vmem:[%s687_s1 + $0x28] sm:$0xff]  }
   0x3   :  { %503 = vmatpush3.bf16.msra.mxu0 %v550_v0  ;;  %542 = vmatpush3.bf16.msra.mxu1 %v550_v0  ;;  %v559_v5 = vld [vmem:[%s688_s0 + $0x20] sm:$0xff]   ;;  %v556_v8 = vld [vmem:[%s687_s1 + $0x30] sm:$0xff]   ;;  %v557_v9 = vld [vmem:[%s687_s1 + $0x38] sm:$0xff]  }
   0x4   :  { %504 = vmatprep.subr.bf16.mxu0 %v551_v1  ;;  %535 = vmatprep.subr.bf16.mxu1 %v551_v1  ;;  %v554_v6 = vld [vmem:[%s687_s1 + $0x20] sm:$0xff]   ;;  %v560_v10 = vld [vmem:[%s688_s0 + $0x8] sm:$0xff]   ;;  %v562_v12 = vld [vmem:[%s688_s0 + $0x10] sm:$0xff]  }
   0x5   :  { %518 = vmatprep.mubr.bf16.mxu0 %v558_v4  ;;  %526 = vmatprep.mubr.bf16.mxu1 %v559_v5  ;;  %v561_v11 = vld [vmem:[%s688_s0 + $0x28] sm:$0xff]   ;;  %v563_v13 = vld [vmem:[%s688_s0 + $0x30] sm:$0xff]   ;;  %v564_v14 = vld [vmem:[%s688_s0 + $0x18] sm:$0xff]  }
   0x6   :  { %v565_v15 = vld [vmem:[%s688_s0 + $0x38] sm:$0xff]   ;;  %v405_v16 = vld [vmem:[%s689_s2] ss:$0 sm:$0xff] }
   0x7   :  { %505 = vmatpush3.bf16.msra.mxu0 %v551_v1  ;;  %543 = vmatpush3.bf16.msra.mxu1 %v551_v1  ;;  %v645_v18 = vld [vmem:[%s690_s3] ss:$0 sm:$0xff] }
   0x8   :  { %506 = vmatprep.subr.bf16.mxu0 %v552_v2  ;;  %536 = vmatprep.subr.bf16.mxu1 %v552_v2 }
   0xb   :  { %507 = vmatpush3.bf16.msra.mxu0 %v552_v2  ;;  %544 = vmatpush3.bf16.msra.mxu1 %v552_v2 }
   0xc   :  { %508 = vmatprep.subr.bf16.mxu0 %v553_v3  ;;  %537 = vmatprep.subr.bf16.mxu1 %v553_v3 }
   0xf   :  { %509 = vmatpush3.bf16.msra.mxu0 %v553_v3  ;;  %545 = vmatpush3.bf16.msra.mxu1 %v553_v3 }
  0x10   :  { %510 = vmatprep.subr.bf16.mxu0 %v554_v6  ;;  %538 = vmatprep.subr.bf16.mxu1 %v554_v6 }
  0x13   :  { %511 = vmatpush3.bf16.msra.mxu0 %v554_v6  ;;  %546 = vmatpush3.bf16.msra.mxu1 %v554_v6 }
  0x14   :  { %512 = vmatprep.subr.bf16.mxu0 %v555_v7  ;;  %539 = vmatprep.subr.bf16.mxu1 %v555_v7 }
  0x17   :  { %513 = vmatpush3.bf16.msra.mxu0 %v555_v7  ;;  %547 = vmatpush3.bf16.msra.mxu1 %v555_v7 }
  0x18   :  { %514 = vmatprep.subr.bf16.mxu0 %v556_v8  ;;  %540 = vmatprep.subr.bf16.mxu1 %v556_v8 }
  0x1b   :  { %515 = vmatpush3.bf16.msra.mxu0 %v556_v8  ;;  %548 = vmatpush3.bf16.msra.mxu1 %v556_v8 }
  0x1c   :  { %516 = vmatprep.subr.bf16.mxu0 %v557_v9  ;;  %541 = vmatprep.subr.bf16.mxu1 %v557_v9 }
  0x1f   :  { %517 = vmatpush3.bf16.msra.mxu0 %v557_v9  ;;  %549 = vmatpush3.bf16.msra.mxu1 %v557_v9 }
  0x22   :  { %519 = vmatmul.mubr.bf16.vlgmr.msra.gmra.mrb[0].mxu0 %v560_v10  ;;  %527 = vmatmul.mubr.bf16.vlgmr.msra.gmra.mrb[0].mxu1 %v561_v11 }
  0x23   :  { %522 = vmatprep.mubr.bf16.mxu0 %v562_v12  ;;  %530 = vmatprep.mubr.bf16.mxu1 %v563_v13 }
  0x2a   :  { %523 = vmatmul.mubr.bf16.gmra.mrb[4].mxu0 %v564_v14  ;;  %531 = vmatmul.mubr.bf16.gmra.mrb[4].mxu1 %v565_v15 }
  0xf5   :  { %v520_v17 = vpop.f32.mrb[0].mxu0  ;;  %v528_v19 = vpop.f32.mrb[0].mxu1 }
  0xf6   :  { %v252_v20 = vmul.f32 %v520_v17, %v405_v16  ;;  %v260_v21 = vmul.f32 %v528_v19, %v405_v16  ;;  %v180_v22 = vpop.f32.mrb[1].mxu0  ;;  %v212_v23 = vpop.f32.mrb[1].mxu1 }
  0xf7   :  { %v250_v24 = vmul.f32 %v405_v16, %v180_v22  ;;  %v258_v25 = vmul.f32 %v405_v16, %v212_v23  ;;  %v521_v26 = vpop.f32.mrb[2].mxu0  ;;  %v529_v27 = vpop.f32.mrb[2].mxu1 }
  0xf8   :  { %v275_v28 = vadd.f32 %v645_v18, %v252_v20  ;;  %v283_v29 = vadd.f32 %v645_v18, %v260_v21  ;;  %v253_v30 = vmul.f32 %v521_v26, %v405_v16  ;;  %v261_v31 = vmul.f32 %v529_v27, %v405_v16  ;;  %v183_v32 = vpop.f32.mrb[3].mxu0  ;;  %v215_v33 = vpop.f32.mrb[3].mxu1 }
  0xf9   :  { %v273_v34 = vadd.f32 %v645_v18, %v250_v24  ;;  %v281_v35 = vadd.f32 %v645_v18, %v258_v25  ;;  %v251_v36 = vmul.f32 %v405_v16, %v183_v32  ;;  %v259_v37 = vmul.f32 %v405_v16, %v215_v33 }
  0xfa   :  { %v276_v38 = vadd.f32 %v645_v18, %v253_v30  ;;  %v284_v39 = vadd.f32 %v645_v18, %v261_v31  ;;  %v291_v42 = vmax.f32 %v275_v28, 0.0  ;;  %v299_v43 = vmax.f32 %v283_v29, 0.0 }
  0xfb   :  { %v274_v40 = vadd.f32 %v645_v18, %v251_v36  ;;  %v282_v41 = vadd.f32 %v645_v18, %v259_v37  ;;  %v289_v46 = vmax.f32 %v273_v34, 0.0  ;;  %v297_v47 = vmax.f32 %v281_v35, 0.0 }
  0xfc   :  { %v292_v44 = vmax.f32 %v276_v38, 0.0  ;;  %v300_v45 = vmax.f32 %v284_v39, 0.0 }
  0xfd   :  { %v290_v48 = vmax.f32 %v274_v40, 0.0  ;;  %v298_v49 = vmax.f32 %v282_v41, 0.0  ;;  %v524_v50 = vpop.f32.mrb[4].mxu0  ;;  %v532_v51 = vpop.f32.mrb[4].mxu1 }
  0xfe   :  { %v447_v52 = vpack.c.bf16 %v292_v44, %v291_v42  ;;  %v467_v53 = vpack.c.bf16 %v300_v45, %v299_v43  ;;  %v256_v54 = vmul.f32 %v524_v50, %v405_v16  ;;  %v264_v55 = vmul.f32 %v532_v51, %v405_v16  ;;  %v196_v56 = vpop.f32.mrb[5].mxu0  ;;  %v228_v57 = vpop.f32.mrb[5].mxu1 }
  0xff   :  { %v442_v58 = vpack.c.bf16 %v290_v48, %v289_v46  ;;  %v462_v59 = vpack.c.bf16 %v298_v49, %v297_v47  ;;  %v254_v60 = vmul.f32 %v405_v16, %v196_v56  ;;  %v262_v61 = vmul.f32 %v405_v16, %v228_v57  ;;  %v525_v62 = vpop.f32.mrb[6].mxu0  ;;  %v533_v63 = vpop.f32.mrb[6].mxu1 }
 0x100   :  { %479 = vst [vmem:[%s691_s4 + $0x8] sm:$0xff] %v447_v52   ;;  %483 = vst [vmem:[%s691_s4 + $0x28] sm:$0xff] %v467_v53   ;;  %v279_v0 = vadd.f32 %v645_v18, %v256_v54  ;;  %v287_v1 = vadd.f32 %v645_v18, %v264_v55  ;;  %v257_v2 = vmul.f32 %v525_v62, %v405_v16  ;;  %v199_v4 = vpop.f32.mrb[7].mxu0  ;;  %v231_v5 = vpop.f32.mrb[7].mxu1 }
 0x101   :  { %v265_v3 = vmul.f32 %v533_v63, %v405_v16  ;;  %443 = vst [vmem:[%s691_s4] sm:$0xff] %v442_v58   ;;  %482 = vst [vmem:[%s691_s4 + $0x20] sm:$0xff] %v462_v59   ;;  %v277_v6 = vadd.f32 %v645_v18, %v254_v60  ;;  %v285_v7 = vadd.f32 %v645_v18, %v262_v61 }
 0x102   :  { %v255_v8 = vmul.f32 %v405_v16, %v199_v4  ;;  %v263_v9 = vmul.f32 %v405_v16, %v231_v5  ;;  %v280_v10 = vadd.f32 %v645_v18, %v257_v2  ;;  %v295_v14 = vmax.f32 %v279_v0, 0.0 }
 0x103   :  { %v288_v11 = vadd.f32 %v645_v18, %v265_v3  ;;  %v303_v15 = vmax.f32 %v287_v1, 0.0  ;;  %v293_v20 = vmax.f32 %v277_v6, 0.0  ;;  %v301_v21 = vmax.f32 %v285_v7, 0.0 }
 0x104   :  { %v278_v12 = vadd.f32 %v645_v18, %v255_v8  ;;  %v286_v13 = vadd.f32 %v645_v18, %v263_v9  ;;  %v296_v17 = vmax.f32 %v280_v10, 0.0 }
 0x105   :  { %v304_v19 = vmax.f32 %v288_v11, 0.0 }
 0x106   :  { %v294_v22 = vmax.f32 %v278_v12, 0.0  ;;  %v302_v23 = vmax.f32 %v286_v13, 0.0  ;;  %v457_v24 = vpack.c.bf16 %v296_v17, %v295_v14 }
 0x107   :  { %v477_v25 = vpack.c.bf16 %v304_v19, %v303_v15 }
 0x108   :  { %v452_v26 = vpack.c.bf16 %v294_v22, %v293_v20  ;;  %v472_v16 = vpack.c.bf16 %v302_v23, %v301_v21  ;;  %481 = vst [vmem:[%s691_s4 + $0x18] sm:$0xff] %v457_v24  }
 0x109   :  { %485 = vst [vmem:[%s691_s4 + $0x38] sm:$0xff] %v477_v25  }
 0x10a   :  { %480 = vst [vmem:[%s691_s4 + $0x10] sm:$0xff] %v452_v26   ;;  %484 = vst [vmem:[%s691_s4 + $0x30] sm:$0xff] %v472_v16  }

// kernel: basic_block_forward.3
= control target key start
LH: loop header
LB: loop body
LE: loop exit
PB: predicated region body
PF: predicated region fallthrough
CT: control target
= control target key end

     0   :  { %s3369_s1 = inlined_call_operand.vmem [shape: bf16[1152,128], index: 1, kind: input, shape index: {}]   ;;  %s3370_s0 = inlined_call_operand.vmem [shape: bf16[128,1152], index: 0, kind: input, shape index: {}]   ;;  %s3371_s5 = inlined_call_operand.vmem [shape: bf16[128,128], index: 5, kind: input, shape index: {}]   ;;  %s3372_s4 = inlined_call_operand.vmem [shape: bf16[128,128], index: 4, kind: input, shape index: {}]   ;;  %s3373_s6 = inlined_call_operand.vmem [shape: f32[1,128], index: 6, kind: input, shape index: {}]   ;;  %s3374_s2 = inlined_call_operand.vmem [shape: f32[1,128], index: 2, kind: input, shape index: {}]   ;;  %s3375_s7 = inlined_call_operand.vmem [shape: f32[1,128], index: 7, kind: input, shape index: {}]   ;;  %s3376_s3 = inlined_call_operand.vmem [shape: f32[1,128], index: 3, kind: input, shape index: {}]   ;;  %s3377_s8 = inlined_call_operand.vmem [shape: f32[128,128], index: 8, kind: output, shape index: {}]  }
   0x1   :  { %v2424_v0 = vld [vmem:[%s3369_s1 + $0x40] sm:$0xff]   ;;  %v2428_v4 = vld [vmem:[%s3369_s1 + $0x48] sm:$0xff]   ;;  %v2432_v8 = vld [vmem:[%s3369_s1 + $0x50] sm:$0xff]  }
   0x2   :  { %v2425_v1 = vld [vmem:[%s3369_s1 + $0xc0] sm:$0xff]   ;;  %2072 = vmatprep.subr.bf16.mxu0 %v2424_v0  ;;  %v2429_v5 = vld [vmem:[%s3369_s1 + $0xc8] sm:$0xff]   ;;  %v2433_v9 = vld [vmem:[%s3369_s1 + $0xd0] sm:$0xff]  }
   0x3   :  { %v2426_v2 = vld [vmem:[%s3369_s1] sm:$0xff]   ;;  %2136 = vmatprep.subr.bf16.mxu1 %v2425_v1  ;;  %v2430_v6 = vld [vmem:[%s3369_s1 + $0x8] sm:$0xff]   ;;  %v2434_v10 = vld [vmem:[%s3369_s1 + $0x10] sm:$0xff]  }
   0x4   :  { %v2427_v3 = vld [vmem:[%s3369_s1 + $0x80] sm:$0xff]   ;;  %2073 = vmatpush3.bf16.msra.mxu0 %v2426_v2  ;;  %v2431_v7 = vld [vmem:[%s3369_s1 + $0x88] sm:$0xff]   ;;  %v2435_v11 = vld [vmem:[%s3369_s1 + $0x90] sm:$0xff]  }
   0x5   :  { %2137 = vmatpush3.bf16.msra.mxu1 %v2427_v3  ;;  %2074 = vmatprep.subr.bf16.mxu0 %v2428_v4  ;;  %v2436_v12 = vld [vmem:[%s3369_s1 + $0x58] sm:$0xff]   ;;  %v2440_v16 = vld [vmem:[%s3369_s1 + $0x60] sm:$0xff]   ;;  %v2444_v20 = vld [vmem:[%s3369_s1 + $0x68] sm:$0xff]  }
   0x6   :  { %2138 = vmatprep.subr.bf16.mxu1 %v2429_v5  ;;  %v2437_v13 = vld [vmem:[%s3369_s1 + $0xd8] sm:$0xff]   ;;  %v2441_v17 = vld [vmem:[%s3369_s1 + $0xe0] sm:$0xff]   ;;  %v2445_v21 = vld [vmem:[%s3369_s1 + $0xe8] sm:$0xff]  }
   0x7   :  { %v2438_v14 = vld [vmem:[%s3369_s1 + $0x18] sm:$0xff]   ;;  %v2442_v18 = vld [vmem:[%s3369_s1 + $0x20] sm:$0xff]   ;;  %v2446_v22 = vld [vmem:[%s3369_s1 + $0x28] sm:$0xff]  }
   0x8   :  { %2075 = vmatpush3.bf16.msra.mxu0 %v2430_v6  ;;  %v2439_v15 = vld [vmem:[%s3369_s1 + $0x98] sm:$0xff]   ;;  %v2443_v19 = vld [vmem:[%s3369_s1 + $0xa0] sm:$0xff]   ;;  %v2447_v23 = vld [vmem:[%s3369_s1 + $0xa8] sm:$0xff]  }
   0x9   :  { %2139 = vmatpush3.bf16.msra.mxu1 %v2431_v7  ;;  %2076 = vmatprep.subr.bf16.mxu0 %v2432_v8  ;;  %v2448_v24 = vld [vmem:[%s3369_s1 + $0x70] sm:$0xff]   ;;  %v2452_v28 = vld [vmem:[%s3369_s1 + $0x78] sm:$0xff]   ;;  %v2456_v32 = vld [vmem:[%s3370_s0] ss:$36 sps:$4 sm:$0xff]  }
   0xa   :  { %2140 = vmatprep.subr.bf16.mxu1 %v2433_v9  ;;  %v2449_v25 = vld [vmem:[%s3369_s1 + $0xf0] sm:$0xff]   ;;  %v2453_v29 = vld [vmem:[%s3369_s1 + $0xf8] sm:$0xff]   ;;  %v2458_v33 = vld [vmem:[%s3370_s0 + $0x4] ss:$36 sps:$4 sm:$0xff]  }
   0xb   :  { %v2450_v26 = vld [vmem:[%s3369_s1 + $0x30] sm:$0xff]   ;;  %v2454_v30 = vld [vmem:[%s3369_s1 + $0x38] sm:$0xff]   ;;  %v2459_v34 = vld [vmem:[%s3370_s0 + $0x8] ss:$36 sps:$4 sm:$0xff]   ;;  %1086 = vmatprep.mubr.bf16.mxu0 %v2458_v33 }
   0xc   :  { %2077 = vmatpush3.bf16.msra.mxu0 %v2434_v10  ;;  %v2451_v27 = vld [vmem:[%s3369_s1 + $0xb0] sm:$0xff]   ;;  %v2455_v31 = vld [vmem:[%s3369_s1 + $0xb8] sm:$0xff]   ;;  %v2462_v36 = vld [vmem:[%s3369_s1 + $0x140] sm:$0xff]  }
   0xd   :  { %2141 = vmatpush3.bf16.msra.mxu1 %v2435_v11  ;;  %2078 = vmatprep.subr.bf16.mxu0 %v2436_v12  ;;  %v2461_v35 = vld [vmem:[%s3370_s0 + $0xc] ss:$36 sps:$4 sm:$0xff]   ;;  %v2463_v37 = vld [vmem:[%s3369_s1 + $0x100] sm:$0xff]   ;;  %v2468_v41 = vld [vmem:[%s3370_s0 + $0x54] ss:$36 sps:$4 sm:$0xff]  }
   0xe   :  { %2142 = vmatprep.subr.bf16.mxu1 %v2437_v13  ;;  %1183 = vmatprep.mubr.bf16.mxu1 %v2461_v35  ;;  %v2464_v38 = vld [vmem:[%s3369_s1 + $0x1c0] sm:$0xff]   ;;  %v2466_v40 = vld [vmem:[%s3370_s0 + $0x4c] ss:$36 sps:$4 sm:$0xff]   ;;  %v2476_v48 = vld [vmem:[%s3370_s0 + $0x94] ss:$36 sps:$4 sm:$0xff]  }
   0xf   :  { %v2465_v39 = vld [vmem:[%s3369_s1 + $0x180] sm:$0xff]   ;;  %v2470_v42 = vld [vmem:[%s3370_s0 + $0x48] ss:$36 sps:$4 sm:$0xff]   ;;  %v2471_v43 = vld [vmem:[%s3370_s0 + $0x50] ss:$36 sps:$4 sm:$0xff]  }
  0x10   :  { %2079 = vmatpush3.bf16.msra.mxu0 %v2438_v14  ;;  %v2472_v44 = vld [vmem:[%s3369_s1 + $0x148] sm:$0xff]   ;;  %v2478_v49 = vld [vmem:[%s3370_s0 + $0x9c] ss:$36 sps:$4 sm:$0xff]   ;;  %v2480_v50 = vld [vmem:[%s3370_s0 + $0x90] ss:$36 sps:$4 sm:$0xff]  }
  0x11   :  { %2143 = vmatpush3.bf16.msra.mxu1 %v2439_v15  ;;  %2080 = vmatprep.subr.bf16.mxu0 %v2440_v16  ;;  %v2473_v45 = vld [vmem:[%s3369_s1 + $0x108] sm:$0xff]   ;;  %v2481_v51 = vld [vmem:[%s3370_s0 + $0x98] ss:$36 sps:$4 sm:$0xff]   ;;  %v2482_v52 = vld [vmem:[%s3369_s1 + $0x150] sm:$0xff]  }
  0x12   :  { %2144 = vmatprep.subr.bf16.mxu1 %v2441_v17  ;;  %v2474_v46 = vld [vmem:[%s3369_s1 + $0x1c8] sm:$0xff]   ;;  %v2483_v53 = vld [vmem:[%s3369_s1 + $0x110] sm:$0xff]   ;;  %v2486_v56 = vld [vmem:[%s3370_s0 + $0xdc] ss:$36 sps:$4 sm:$0xff]  }
  0x13   :  { %v2475_v47 = vld [vmem:[%s3369_s1 + $0x188] sm:$0xff]   ;;  %v2484_v54 = vld [vmem:[%s3369_s1 + $0x1d0] sm:$0xff]   ;;  %v2490_v58 = vld [vmem:[%s3370_s0 + $0xd8] ss:$36 sps:$4 sm:$0xff]  }
  0x14   :  { %2081 = vmatpush3.bf16.msra.mxu0 %v2442_v18  ;;  %v2485_v55 = vld [vmem:[%s3369_s1 + $0x190] sm:$0xff]   ;;  %v2488_v57 = vld [vmem:[%s3370_s0 + $0xe4] ss:$36 sps:$4 sm:$0xff]   ;;  %v2492_v60 = vld [vmem:[%s3369_s1 + $0x158] sm:$0xff]  }
  0x15   :  { %2145 = vmatpush3.bf16.msra.mxu1 %v2443_v19  ;;  %2082 = vmatprep.subr.bf16.mxu0 %v2444_v20  ;;  %v2491_v59 = vld [vmem:[%s3370_s0 + $0xe0] ss:$36 sps:$4 sm:$0xff]   ;;  %v2493_v61 = vld [vmem:[%s3369_s1 + $0x118] sm:$0xff]   ;;  %v2498_v1 = vld [vmem:[%s3370_s0 + $0x12c] ss:$36 sps:$4 sm:$0xff]  }
  0x16   :  { %2146 = vmatprep.subr.bf16.mxu1 %v2445_v21  ;;  %v2494_v62 = vld [vmem:[%s3369_s1 + $0x1d8] sm:$0xff]   ;;  %v2496_v0 = vld [vmem:[%s3370_s0 + $0x124] ss:$36 sps:$4 sm:$0xff]   ;;  %v2506_v8 = vld [vmem:[%s3370_s0 + $0x16c] ss:$36 sps:$4 sm:$0xff]  }
  0x17   :  { %v2495_v63 = vld [vmem:[%s3369_s1 + $0x198] sm:$0xff]   ;;  %v2500_v2 = vld [vmem:[%s3370_s0 + $0x120] ss:$36 sps:$4 sm:$0xff]   ;;  %v2501_v4 = vld [vmem:[%s3370_s0 + $0x128] ss:$36 sps:$4 sm:$0xff]  }
  0x18   :  { %2083 = vmatpush3.bf16.msra.mxu0 %v2446_v22  ;;  %v2502_v3 = vld [vmem:[%s3369_s1 + $0x160] sm:$0xff]   ;;  %v2508_v9 = vld [vmem:[%s3370_s0 + $0x174] ss:$36 sps:$4 sm:$0xff]   ;;  %v2512_v10 = vld [vmem:[%s3369_s1 + $0x168] sm:$0xff]  }
  0x19   :  { %2147 = vmatpush3.bf16.msra.mxu1 %v2447_v23  ;;  %2084 = vmatprep.subr.bf16.mxu0 %v2448_v24  ;;  %v2503_v5 = vld [vmem:[%s3369_s1 + $0x120] sm:$0xff]   ;;  %v2513_v11 = vld [vmem:[%s3369_s1 + $0x128] sm:$0xff]   ;;  %v2511_v15 = vld [vmem:[%s3370_s0 + $0x170] ss:$36 sps:$4 sm:$0xff]  }
  0x1a   :  { %2148 = vmatprep.subr.bf16.mxu1 %v2449_v25  ;;  %v2504_v6 = vld [vmem:[%s3369_s1 + $0x1e0] sm:$0xff]   ;;  %v2510_v12 = vld [vmem:[%s3370_s0 + $0x168] ss:$36 sps:$4 sm:$0xff]   ;;  %v2516_v16 = vld [vmem:[%s3370_s0 + $0x1b4] ss:$36 sps:$4 sm:$0xff]  }
  0x1b   :  { %v2505_v7 = vld [vmem:[%s3369_s1 + $0x1a0] sm:$0xff]   ;;  %v2514_v13 = vld [vmem:[%s3369_s1 + $0x1e8] sm:$0xff]   ;;  %v2522_v18 = vld [vmem:[%s3369_s1 + $0x170] sm:$0xff]  }
  0x1c   :  { %2085 = vmatpush3.bf16.msra.mxu0 %v2450_v26  ;;  %v2515_v14 = vld [vmem:[%s3369_s1 + $0x1a8] sm:$0xff]   ;;  %v2518_v17 = vld [vmem:[%s3370_s0 + $0x1bc] ss:$36 sps:$4 sm:$0xff]   ;;  %v2523_v19 = vld [vmem:[%s3369_s1 + $0x130] sm:$0xff]  }
  0x1d   :  { %2149 = vmatpush3.bf16.msra.mxu1 %v2451_v27  ;;  %2086 = vmatprep.subr.bf16.mxu0 %v2452_v28  ;;  %v2524_v20 = vld [vmem:[%s3369_s1 + $0x1f0] sm:$0xff]   ;;  %v2521_v23 = vld [vmem:[%s3370_s0 + $0x1b8] ss:$36 sps:$4 sm:$0xff]   ;;  %v2528_v25 = vld [vmem:[%s3370_s0 + $0x204] ss:$36 sps:$4 sm:$0xff]  }
  0x1e   :  { %2150 = vmatprep.subr.bf16.mxu1 %v2453_v29  ;;  %v2525_v21 = vld [vmem:[%s3369_s1 + $0x1b0] sm:$0xff]   ;;  %v2526_v24 = vld [vmem:[%s3370_s0 + $0x1fc] ss:$36 sps:$4 sm:$0xff]  }
  0x1f   :  { %v2520_v22 = vld [vmem:[%s3370_s0 + $0x1b0] ss:$36 sps:$4 sm:$0xff]   ;;  %v2532_v26 = vld [vmem:[%s3369_s1 + $0x178] sm:$0xff]   ;;  %v2542_v33 = vld [vmem:[%s3369_s1 + $0x200] sm:$0xff]  }
  0x20   :  { %2087 = vmatpush3.bf16.msra.mxu0 %v2454_v30  ;;  %v2533_v27 = vld [vmem:[%s3369_s1 + $0x138] sm:$0xff]  }
  0x21   :  { %2151 = vmatpush3.bf16.msra.mxu1 %v2455_v31  ;;  %2200 = vmatprep.subr.bf16.mxu0 %v2462_v36  ;;  %v2534_v28 = vld [vmem:[%s3369_s1 + $0x1f8] sm:$0xff]   ;;  %v2531_v31 = vld [vmem:[%s3370_s0 + $0x200] ss:$36 sps:$4 sm:$0xff]   ;;  %v2536_v36 = vld [vmem:[%s3370_s0 + $0x10] ss:$36 sps:$4 sm:$0xff]  }
  0x22   :  { %2264 = vmatprep.subr.bf16.mxu1 %v2464_v38  ;;  %v2535_v29 = vld [vmem:[%s3369_s1 + $0x1b8] sm:$0xff]  }
  0x23   :  { %1087 = vmatmul.mubr.bf16.vlgmr.msra.gmra.mrb[0].mxu0 %v2456_v32  ;;  %v2530_v30 = vld [vmem:[%s3370_s0 + $0x1f8] ss:$36 sps:$4 sm:$0xff]  }
  0x24   :  { %1184 = vmatmul.mubr.bf16.vlgmr.msra.gmra.mrb[0].mxu1 %v2459_v34  ;;  %2201 = vmatpush3.bf16.msra.mxu0 %v2463_v37  ;;  %v2538_v32 = vld [vmem:[%s3370_s0 + $0x14] ss:$36 sps:$4 sm:$0xff]   ;;  %v2543_v34 = vld [vmem:[%s3371_s5] sm:$0xff]  }
  0x25   :  { %2265 = vmatpush3.bf16.msra.mxu1 %v2465_v39  ;;  %1094 = vmatprep.mubr.bf16.mxu0 %v2466_v40  ;;  %v2541_v35 = vld [vmem:[%s3370_s0 + $0x1c] ss:$36 sps:$4 sm:$0xff]   ;;  %v2546_v39 = vld [vmem:[%s3370_s0 + $0x64] ss:$36 sps:$4 sm:$0xff]  }
  0x26   :  { %1191 = vmatprep.mubr.bf16.mxu1 %v2468_v41  ;;  %2202 = vmatprep.subr.bf16.mxu0 %v2472_v44  ;;  %v2539_v37 = vld [vmem:[%s3370_s0 + $0x18] ss:$36 sps:$4 sm:$0xff]   ;;  %v2550_v40 = vld [vmem:[%s3369_s1 + $0x208] sm:$0xff]   ;;  %v2559_v44 = vld [vmem:[%s3371_s5 + $0x10] sm:$0xff]  }
  0x27   :  { %2266 = vmatprep.subr.bf16.mxu1 %v2474_v46  ;;  %v2544_v38 = vld [vmem:[%s3370_s0 + $0x5c] ss:$36 sps:$4 sm:$0xff]   ;;  %v2551_v41 = vld [vmem:[%s3371_s5 + $0x8] sm:$0xff]  }
  0x28   :  { %2203 = vmatpush3.bf16.msra.mxu0 %v2473_v45  ;;  %v2549_v45 = vld [vmem:[%s3370_s0 + $0x60] ss:$36 sps:$4 sm:$0xff]  }
  0x29   :  { %2267 = vmatpush3.bf16.msra.mxu1 %v2475_v47  ;;  %2204 = vmatprep.subr.bf16.mxu0 %v2482_v52  ;;  %v2552_v46 = vld [vmem:[%s3370_s0 + $0xa4] ss:$36 sps:$4 sm:$0xff]   ;;  %v2554_v47 = vld [vmem:[%s3370_s0 + $0xac] ss:$36 sps:$4 sm:$0xff]  }
  0x2a   :  { %2268 = vmatprep.subr.bf16.mxu1 %v2484_v54  ;;  %v2574_v52 = vld [vmem:[%s3369_s1 + $0x220] sm:$0xff]   ;;  %v2560_v54 = vld [vmem:[%s3370_s0 + $0xec] ss:$36 sps:$4 sm:$0xff]  }
  0x2b   :  { %1095 = vmatmul.mubr.bf16.gmra.mrb[4].mxu0 %v2470_v42  ;;  %v2548_v42 = vld [vmem:[%s3370_s0 + $0x58] ss:$36 sps:$4 sm:$0xff]  }
  0x2c   :  { %1192 = vmatmul.mubr.bf16.gmra.mrb[4].mxu1 %v2471_v43  ;;  %1102 = vmatprep.mubr.bf16.mxu0 %v2476_v48  ;;  %v2558_v43 = vld [vmem:[%s3369_s1 + $0x210] sm:$0xff]   ;;  %v2566_v48 = vld [vmem:[%s3369_s1 + $0x218] sm:$0xff]  }
  0x2d   :  { %1199 = vmatprep.mubr.bf16.mxu1 %v2478_v49  ;;  %2205 = vmatpush3.bf16.msra.mxu0 %v2483_v53  ;;  %v2567_v49 = vld [vmem:[%s3371_s5 + $0x18] sm:$0xff]   ;;  %v2575_v53 = vld [vmem:[%s3371_s5 + $0x20] sm:$0xff]  }
  0x2e   :  { %2269 = vmatpush3.bf16.msra.mxu1 %v2485_v55  ;;  %2206 = vmatprep.subr.bf16.mxu0 %v2492_v60  ;;  %v2562_v55 = vld [vmem:[%s3370_s0 + $0xf4] ss:$36 sps:$4 sm:$0xff]  }
  0x2f   :  { %2270 = vmatprep.subr.bf16.mxu1 %v2494_v62  ;;  %v2565_v60 = vld [vmem:[%s3370_s0 + $0xf0] ss:$36 sps:$4 sm:$0xff]  }
  0x30   :  { %v2568_v62 = vld [vmem:[%s3370_s0 + $0x134] ss:$36 sps:$4 sm:$0xff]  }
  0x31   :  { %2207 = vmatpush3.bf16.msra.mxu0 %v2493_v61  ;;  %v2591_v61 = vld [vmem:[%s3371_s5 + $0x30] sm:$0xff]  }
  0x32   :  { %2271 = vmatpush3.bf16.msra.mxu1 %v2495_v63  ;;  %2208 = vmatprep.subr.bf16.mxu0 %v2502_v3  ;;  %v2570_v63 = vld [vmem:[%s3370_s0 + $0x13c] ss:$36 sps:$4 sm:$0xff]  }
  0x33   :  { %1103 = vmatmul.mubr.bf16.gmra.mrb[8].mxu0 %v2480_v50  ;;  %2272 = vmatprep.subr.bf16.mxu1 %v2504_v6  ;;  %v2556_v50 = vld [vmem:[%s3370_s0 + $0xa0] ss:$36 sps:$4 sm:$0xff]   ;;  %v2573_v3 = vld [vmem:[%s3370_s0 + $0x138] ss:$36 sps:$4 sm:$0xff]  }
  0x34   :  { %1200 = vmatmul.mubr.bf16.gmra.mrb[8].mxu1 %v2481_v51  ;;  %1110 = vmatprep.mubr.bf16.mxu0 %v2486_v56  ;;  %v2557_v51 = vld [vmem:[%s3370_s0 + $0xa8] ss:$36 sps:$4 sm:$0xff]   ;;  %v2580_v6 = vld [vmem:[%s3370_s0 + $0x178] ss:$36 sps:$4 sm:$0xff]  }
  0x35   :  { %1207 = vmatprep.mubr.bf16.mxu1 %v2488_v57  ;;  %2209 = vmatpush3.bf16.msra.mxu0 %v2503_v5  ;;  %v2582_v56 = vld [vmem:[%s3369_s1 + $0x228] sm:$0xff]  }
  0x36   :  { %2273 = vmatpush3.bf16.msra.mxu1 %v2505_v7  ;;  %2210 = vmatprep.subr.bf16.mxu0 %v2512_v10  ;;  %v2583_v57 = vld [vmem:[%s3371_s5 + $0x28] sm:$0xff]   ;;  %v2581_v7 = vld [vmem:[%s3370_s0 + $0x180] ss:$36 sps:$4 sm:$0xff]  }
  0x37   :  { %2274 = vmatprep.subr.bf16.mxu1 %v2514_v13  ;;  %v2578_v5 = vld [vmem:[%s3370_s0 + $0x184] ss:$36 sps:$4 sm:$0xff]   ;;  %v2594_v13 = vld [vmem:[%s3370_s0 + $0x214] ss:$36 sps:$4 sm:$0xff]  }
  0x38   :  { %v2588_v10 = vld [vmem:[%s3370_s0 + $0x1c0] ss:$36 sps:$4 sm:$0xff]  }
  0x39   :  { %2211 = vmatpush3.bf16.msra.mxu0 %v2513_v11  ;;  %v2589_v11 = vld [vmem:[%s3370_s0 + $0x1c8] ss:$36 sps:$4 sm:$0xff]  }
  0x3a   :  { %2275 = vmatpush3.bf16.msra.mxu1 %v2515_v14  ;;  %2212 = vmatprep.subr.bf16.mxu0 %v2522_v18  ;;  %v2596_v14 = vld [vmem:[%s3370_s0 + $0x208] ss:$36 sps:$4 sm:$0xff]  }
  0x3b   :  { %1111 = vmatmul.mubr.bf16.gmra.mrb[12].mxu0 %v2490_v58  ;;  %2276 = vmatprep.subr.bf16.mxu1 %v2524_v20  ;;  %v2564_v58 = vld [vmem:[%s3370_s0 + $0xe8] ss:$36 sps:$4 sm:$0xff]   ;;  %v2604_v20 = vld [vmem:[%s3370_s0 + $0xb0] ss:$36 sps:$4 sm:$0xff]  }
  0x3c   :  { %1208 = vmatmul.mubr.bf16.gmra.mrb[12].mxu1 %v2491_v59  ;;  %1118 = vmatprep.mubr.bf16.mxu0 %v2496_v0  ;;  %v2590_v59 = vld [vmem:[%s3369_s1 + $0x230] sm:$0xff]   ;;  %v2598_v0 = vld [vmem:[%s3369_s1 + $0x238] sm:$0xff]   ;;  %v2602_v18 = vld [vmem:[%s3370_s0 + $0x68] ss:$36 sps:$4 sm:$0xff]  }
  0x3d   :  { %1215 = vmatprep.mubr.bf16.mxu1 %v2498_v1  ;;  %2213 = vmatpush3.bf16.msra.mxu0 %v2523_v19  ;;  %v2599_v1 = vld [vmem:[%s3371_s5 + $0x38] sm:$0xff]   ;;  %v2603_v19 = vld [vmem:[%s3372_s4 + $0x8] sm:$0xff]  }
  0x3e   :  { %2277 = vmatpush3.bf16.msra.mxu1 %v2525_v21  ;;  %2214 = vmatprep.subr.bf16.mxu0 %v2532_v26  ;;  %v2605_v21 = vld [vmem:[%s3372_s4 + $0x10] sm:$0xff]   ;;  %v2610_v26 = vld [vmem:[%s3370_s0 + $0x188] ss:$36 sps:$4 sm:$0xff]  }
  0x3f   :  { %2278 = vmatprep.subr.bf16.mxu1 %v2534_v28  ;;  %v2612_v28 = vld [vmem:[%s3370_s0 + $0x1d0] ss:$36 sps:$4 sm:$0xff]  }
  0x41   :  { %2215 = vmatpush3.bf16.msra.mxu0 %v2533_v27  ;;  %v2611_v27 = vld [vmem:[%s3372_s4 + $0x28] sm:$0xff]  }
  0x42   :  { %2279 = vmatpush3.bf16.msra.mxu1 %v2535_v29  ;;  %2360 = vmatprep.subr.bf16.mxu0 %v2542_v33  ;;  %v2613_v29 = vld [vmem:[%s3372_s4 + $0x30] sm:$0xff]  }
  0x43   :  { %1119 = vmatmul.mubr.bf16.gmra.mrb[16].mxu0 %v2500_v2  ;;  %2392 = vmatprep.subr.bf16.mxu1 %v2543_v34  ;;  %v2572_v2 = vld [vmem:[%s3370_s0 + $0x130] ss:$36 sps:$4 sm:$0xff]  }
  0x44   :  { %1216 = vmatmul.mubr.bf16.gmra.mrb[16].mxu1 %v2501_v4  ;;  %1126 = vmatprep.mubr.bf16.mxu0 %v2506_v8  ;;  %v2576_v4 = vld [vmem:[%s3370_s0 + $0x17c] ss:$36 sps:$4 sm:$0xff]   ;;  %v2584_v8 = vld [vmem:[%s3370_s0 + $0x1c4] ss:$36 sps:$4 sm:$0xff]  }
  0x45   :  { %1223 = vmatprep.mubr.bf16.mxu1 %v2508_v9  ;;  %v2586_v9 = vld [vmem:[%s3370_s0 + $0x1cc] ss:$36 sps:$4 sm:$0xff]  }
  0x4b   :  { %1127 = vmatmul.mubr.bf16.gmra.mrb[20].mxu0 %v2510_v12  ;;  %v2592_v12 = vld [vmem:[%s3370_s0 + $0x20c] ss:$36 sps:$4 sm:$0xff]  }
  0x4c   :  { %1224 = vmatmul.mubr.bf16.gmra.mrb[20].mxu1 %v2511_v15  ;;  %1134 = vmatprep.mubr.bf16.mxu0 %v2516_v16  ;;  %v2597_v15 = vld [vmem:[%s3370_s0 + $0x210] ss:$36 sps:$4 sm:$0xff]   ;;  %v2600_v16 = vld [vmem:[%s3370_s0 + $0x20] ss:$36 sps:$4 sm:$0xff]  }
  0x4d   :  { %1231 = vmatprep.mubr.bf16.mxu1 %v2518_v17  ;;  %v2601_v17 = vld [vmem:[%s3372_s4] sm:$0xff]  }
  0x53   :  { %1135 = vmatmul.mubr.bf16.gmra.mrb[24].mxu0 %v2520_v22  ;;  %v2606_v22 = vld [vmem:[%s3370_s0 + $0xf8] ss:$36 sps:$4 sm:$0xff]  }
  0x54   :  { %1232 = vmatmul.mubr.bf16.gmra.mrb[24].mxu1 %v2521_v23  ;;  %1142 = vmatprep.mubr.bf16.mxu0 %v2526_v24  ;;  %v2607_v23 = vld [vmem:[%s3372_s4 + $0x18] sm:$0xff]   ;;  %v2608_v24 = vld [vmem:[%s3370_s0 + $0x140] ss:$36 sps:$4 sm:$0xff]  }
  0x55   :  { %1239 = vmatprep.mubr.bf16.mxu1 %v2528_v25  ;;  %v2609_v25 = vld [vmem:[%s3372_s4 + $0x20] sm:$0xff]  }
  0x5b   :  { %1143 = vmatmul.mubr.bf16.gmra.mrb[28].mxu0 %v2530_v30  ;;  %v2614_v30 = vld [vmem:[%s3370_s0 + $0x218] ss:$36 sps:$4 sm:$0xff]  }
  0x5c   :  { %1240 = vmatmul.mubr.bf16.gmra.mrb[28].mxu1 %v2531_v31  ;;  %1280 = vmatprep.mubr.bf16.mxu0 %v2538_v32  ;;  %v2615_v31 = vld [vmem:[%s3372_s4 + $0x38] sm:$0xff]  }
  0x5d   :  { %1377 = vmatprep.mubr.bf16.mxu1 %v2541_v35 }
  0x63   :  { %1281 = vmatmul.mubr.bf16.vlgmr.msra.gmra.mrb[32].mxu0 %v2536_v36 }
  0x64   :  { %1378 = vmatmul.mubr.bf16.vlgmr.msra.gmra.mrb[32].mxu1 %v2539_v37  ;;  %2361 = vmatpush3.bf16.msra.mxu0 %v2542_v33 }
  0x65   :  { %2393 = vmatpush3.bf16.msra.mxu1 %v2543_v34  ;;  %1288 = vmatprep.mubr.bf16.mxu0 %v2544_v38 }
  0x66   :  { %1385 = vmatprep.mubr.bf16.mxu1 %v2546_v39  ;;  %2362 = vmatprep.subr.bf16.mxu0 %v2550_v40 }
  0x67   :  { %2394 = vmatprep.subr.bf16.mxu1 %v2551_v41 }
  0x68   :  { %2363 = vmatpush3.bf16.msra.mxu0 %v2550_v40 }
  0x69   :  { %2395 = vmatpush3.bf16.msra.mxu1 %v2551_v41  ;;  %2364 = vmatprep.subr.bf16.mxu0 %v2558_v43 }
  0x6a   :  { %2396 = vmatprep.subr.bf16.mxu1 %v2559_v44 }
  0x6b   :  { %1289 = vmatmul.mubr.bf16.gmra.mrb[36].mxu0 %v2548_v42 }
  0x6c   :  { %1386 = vmatmul.mubr.bf16.gmra.mrb[36].mxu1 %v2549_v45  ;;  %1296 = vmatprep.mubr.bf16.mxu0 %v2552_v46 }
  0x6d   :  { %1393 = vmatprep.mubr.bf16.mxu1 %v2554_v47  ;;  %2365 = vmatpush3.bf16.msra.mxu0 %v2558_v43 }
  0x6e   :  { %2397 = vmatpush3.bf16.msra.mxu1 %v2559_v44  ;;  %2366 = vmatprep.subr.bf16.mxu0 %v2566_v48 }
  0x6f   :  { %2398 = vmatprep.subr.bf16.mxu1 %v2567_v49 }
  0x71   :  { %2367 = vmatpush3.bf16.msra.mxu0 %v2566_v48 }
  0x72   :  { %2399 = vmatpush3.bf16.msra.mxu1 %v2567_v49  ;;  %2368 = vmatprep.subr.bf16.mxu0 %v2574_v52 }
  0x73   :  { %1297 = vmatmul.mubr.bf16.gmra.mrb[40].mxu0 %v2556_v50  ;;  %2400 = vmatprep.subr.bf16.mxu1 %v2575_v53 }
  0x74   :  { %1394 = vmatmul.mubr.bf16.gmra.mrb[40].mxu1 %v2557_v51  ;;  %1304 = vmatprep.mubr.bf16.mxu0 %v2560_v54 }
  0x75   :  { %1401 = vmatprep.mubr.bf16.mxu1 %v2562_v55  ;;  %2369 = vmatpush3.bf16.msra.mxu0 %v2574_v52 }
  0x76   :  { %2401 = vmatpush3.bf16.msra.mxu1 %v2575_v53  ;;  %2370 = vmatprep.subr.bf16.mxu0 %v2582_v56 }
  0x77   :  { %2402 = vmatprep.subr.bf16.mxu1 %v2583_v57 }
  0x79   :  { %2371 = vmatpush3.bf16.msra.mxu0 %v2582_v56 }
  0x7a   :  { %2403 = vmatpush3.bf16.msra.mxu1 %v2583_v57  ;;  %2372 = vmatprep.subr.bf16.mxu0 %v2590_v59 }
  0x7b   :  { %1305 = vmatmul.mubr.bf16.gmra.mrb[44].mxu0 %v2564_v58  ;;  %2404 = vmatprep.subr.bf16.mxu1 %v2591_v61 }
  0x7c   :  { %1402 = vmatmul.mubr.bf16.gmra.mrb[44].mxu1 %v2565_v60  ;;  %1312 = vmatprep.mubr.bf16.mxu0 %v2568_v62 }
  0x7d   :  { %1409 = vmatprep.mubr.bf16.mxu1 %v2570_v63  ;;  %2373 = vmatpush3.bf16.msra.mxu0 %v2590_v59 }
  0x7e   :  { %2405 = vmatpush3.bf16.msra.mxu1 %v2591_v61  ;;  %2374 = vmatprep.subr.bf16.mxu0 %v2598_v0 }
  0x7f   :  { %2406 = vmatprep.subr.bf16.mxu1 %v2599_v1 }
  0x81   :  { %2375 = vmatpush3.bf16.msra.mxu0 %v2598_v0 }
  0x82   :  { %2407 = vmatpush3.bf16.msra.mxu1 %v2599_v1 }
  0x83   :  { %1313 = vmatmul.mubr.bf16.gmra.mrb[48].mxu0 %v2572_v2 }
  0x84   :  { %1410 = vmatmul.mubr.bf16.gmra.mrb[48].mxu1 %v2573_v3  ;;  %1320 = vmatprep.mubr.bf16.mxu0 %v2576_v4 }
  0x85   :  { %1417 = vmatprep.mubr.bf16.mxu1 %v2578_v5 }
  0x8b   :  { %1321 = vmatmul.mubr.bf16.gmra.mrb[52].mxu0 %v2580_v6 }
  0x8c   :  { %1418 = vmatmul.mubr.bf16.gmra.mrb[52].mxu1 %v2581_v7  ;;  %1328 = vmatprep.mubr.bf16.mxu0 %v2584_v8 }
  0x8d   :  { %1425 = vmatprep.mubr.bf16.mxu1 %v2586_v9 }
  0x93   :  { %1329 = vmatmul.mubr.bf16.gmra.mrb[56].mxu0 %v2588_v10 }
  0x94   :  { %1426 = vmatmul.mubr.bf16.gmra.mrb[56].mxu1 %v2589_v11  ;;  %1336 = vmatprep.mubr.bf16.mxu0 %v2592_v12 }
  0x95   :  { %1433 = vmatprep.mubr.bf16.mxu1 %v2594_v13 }
  0x9b   :  { %1337 = vmatmul.mubr.bf16.gmra.mrb[60].mxu0 %v2596_v14 }
  0x9c   :  { %1434 = vmatmul.mubr.bf16.gmra.mrb[60].mxu1 %v2597_v15  ;;  %2376 = vmatprep.mubr.bf16.mxu0 %v2600_v16 }
  0x9d   :  { %2408 = vmatprep.mubr.bf16.mxu1 %v2601_v17 }
  0xa3   :  { %2377 = vmatmul.mubr.bf16.vlgmr.msra.gmra.mrb[64].mxu0 %v2602_v18 }
  0xa4   :  { %2409 = vmatmul.mubr.bf16.vlgmr.msra.gmra.mrb[64].mxu1 %v2603_v19  ;;  %2380 = vmatprep.mubr.bf16.mxu0 %v2604_v20 }
  0xa5   :  { %2412 = vmatprep.mubr.bf16.mxu1 %v2605_v21 }
  0xab   :  { %2381 = vmatmul.mubr.bf16.gmra.mrb[68].mxu0 %v2606_v22 }
  0xac   :  { %2413 = vmatmul.mubr.bf16.gmra.mrb[68].mxu1 %v2607_v23  ;;  %2384 = vmatprep.mubr.bf16.mxu0 %v2608_v24 }
  0xad   :  { %2416 = vmatprep.mubr.bf16.mxu1 %v2609_v25 }
  0xb3   :  { %2385 = vmatmul.mubr.bf16.gmra.mrb[72].mxu0 %v2610_v26 }
  0xb4   :  { %2417 = vmatmul.mubr.bf16.gmra.mrb[72].mxu1 %v2611_v27  ;;  %2388 = vmatprep.mubr.bf16.mxu0 %v2612_v28 }
  0xb5   :  { %2420 = vmatprep.mubr.bf16.mxu1 %v2613_v29 }
  0xbb   :  { %2389 = vmatmul.mubr.bf16.gmra.mrb[76].mxu0 %v2614_v30 }
  0xbc   :  { %2421 = vmatmul.mubr.bf16.gmra.mrb[76].mxu1 %v2615_v31 }
  0xf6   :  { %v2088_v32 = vpop.f32.mrb[0].mxu0 }
  0xf7   :  { %v2152_v33 = vpop.f32.mrb[0].mxu1  ;;  %v2089_v34 = vpop.f32.mrb[1].mxu0 }
  0xf8   :  { %v2090_v35 = vadd.f32 %v2089_v34, %v2088_v32  ;;  %v2153_v36 = vpop.f32.mrb[1].mxu1  ;;  %v2091_v37 = vpop.f32.mrb[2].mxu0 }
  0xf9   :  { %v2154_v38 = vadd.f32 %v2153_v36, %v2152_v33  ;;  %v2155_v39 = vpop.f32.mrb[2].mxu1  ;;  %v2092_v40 = vpop.f32.mrb[3].mxu0 }
  0xfa   :  { %v2093_v41 = vadd.f32 %v2092_v40, %v2091_v37  ;;  %v2156_v42 = vpop.f32.mrb[3].mxu1 }
  0xfb   :  { %v3141_v43 = vadd.f32 %v2154_v38, %v2090_v35  ;;  %v2157_v44 = vadd.f32 %v2156_v42, %v2155_v39 }
  0xfd   :  { %v3143_v45 = vadd.f32 %v2157_v44, %v2093_v41 }
  0xfe   :  { %v2094_v46 = vpop.f32.mrb[4].mxu0 }
  0xff   :  { %v2158_v47 = vpop.f32.mrb[4].mxu1  ;;  %v2095_v48 = vpop.f32.mrb[5].mxu0 }
 0x100   :  { %v2096_v49 = vadd.f32 %v2095_v48, %v2094_v46  ;;  %v2159_v50 = vpop.f32.mrb[5].mxu1  ;;  %v2097_v51 = vpop.f32.mrb[6].mxu0 }
 0x101   :  { %v2160_v52 = vadd.f32 %v2159_v50, %v2158_v47  ;;  %v2161_v53 = vpop.f32.mrb[6].mxu1  ;;  %v2098_v54 = vpop.f32.mrb[7].mxu0 }
 0x102   :  { %v2099_v55 = vadd.f32 %v2098_v54, %v2097_v51  ;;  %v2162_v56 = vpop.f32.mrb[7].mxu1 }
 0x103   :  { %v3145_v57 = vadd.f32 %v2160_v52, %v2096_v49  ;;  %v2163_v58 = vadd.f32 %v2162_v56, %v2161_v53 }
 0x105   :  { %v3147_v59 = vadd.f32 %v2163_v58, %v2099_v55 }
 0x106   :  { %v2100_v60 = vpop.f32.mrb[8].mxu0 }
 0x107   :  { %v2164_v61 = vpop.f32.mrb[8].mxu1  ;;  %v2101_v62 = vpop.f32.mrb[9].mxu0 }
 0x108   :  { %v2102_v63 = vadd.f32 %v2101_v62, %v2100_v60  ;;  %v2165_v0 = vpop.f32.mrb[9].mxu1  ;;  %v2103_v1 = vpop.f32.mrb[10].mxu0 }
 0x109   :  { %v2166_v2 = vadd.f32 %v2165_v0, %v2164_v61  ;;  %v2167_v3 = vpop.f32.mrb[10].mxu1  ;;  %v2104_v4 = vpop.f32.mrb[11].mxu0 }
 0x10a   :  { %v2105_v5 = vadd.f32 %v2104_v4, %v2103_v1  ;;  %v2168_v6 = vpop.f32.mrb[11].mxu1 }
 0x10b   :  { %v3149_v7 = vadd.f32 %v2166_v2, %v2102_v63  ;;  %v2169_v8 = vadd.f32 %v2168_v6, %v2167_v3 }
 0x10d   :  { %v3151_v9 = vadd.f32 %v2169_v8, %v2105_v5 }
 0x10e   :  { %v2106_v10 = vpop.f32.mrb[12].mxu0 }
 0x10f   :  { %v2170_v11 = vpop.f32.mrb[12].mxu1  ;;  %v2107_v12 = vpop.f32.mrb[13].mxu0 }
 0x110   :  { %v2108_v13 = vadd.f32 %v2107_v12, %v2106_v10  ;;  %v2171_v14 = vpop.f32.mrb[13].mxu1  ;;  %v2109_v15 = vpop.f32.mrb[14].mxu0 }
 0x111   :  { %v2172_v16 = vadd.f32 %v2171_v14, %v2170_v11  ;;  %v2173_v17 = vpop.f32.mrb[14].mxu1  ;;  %v2110_v18 = vpop.f32.mrb[15].mxu0 }
 0x112   :  { %v2111_v19 = vadd.f32 %v2110_v18, %v2109_v15  ;;  %v2174_v20 = vpop.f32.mrb[15].mxu1 }
 0x113   :  { %v3153_v21 = vadd.f32 %v2172_v16, %v2108_v13  ;;  %v2175_v22 = vadd.f32 %v2174_v20, %v2173_v17 }
 0x115   :  { %v3155_v23 = vadd.f32 %v2175_v22, %v2111_v19 }
 0x116   :  { %v2112_v24 = vpop.f32.mrb[16].mxu0 }
 0x117   :  { %v2176_v25 = vpop.f32.mrb[16].mxu1  ;;  %v2113_v26 = vpop.f32.mrb[17].mxu0 }
 0x118   :  { %v2114_v27 = vadd.f32 %v2113_v26, %v2112_v24  ;;  %v2177_v28 = vpop.f32.mrb[17].mxu1  ;;  %v2115_v29 = vpop.f32.mrb[18].mxu0 }
 0x119   :  { %v2178_v30 = vadd.f32 %v2177_v28, %v2176_v25  ;;  %v2179_v31 = vpop.f32.mrb[18].mxu1  ;;  %v2116_v32 = vpop.f32.mrb[19].mxu0 }
 0x11a   :  { %v2117_v33 = vadd.f32 %v2116_v32, %v2115_v29  ;;  %v2180_v34 = vpop.f32.mrb[19].mxu1 }
 0x11b   :  { %v3157_v35 = vadd.f32 %v2178_v30, %v2114_v27  ;;  %v2181_v36 = vadd.f32 %v2180_v34, %v2179_v31 }
 0x11d   :  { %v3159_v37 = vadd.f32 %v2181_v36, %v2117_v33 }
 0x11e   :  { %v2118_v38 = vpop.f32.mrb[20].mxu0 }
 0x11f   :  { %v2182_v39 = vpop.f32.mrb[20].mxu1  ;;  %v2119_v40 = vpop.f32.mrb[21].mxu0 }
 0x120   :  { %v2120_v41 = vadd.f32 %v2119_v40, %v2118_v38  ;;  %v2183_v42 = vpop.f32.mrb[21].mxu1  ;;  %v2121_v44 = vpop.f32.mrb[22].mxu0 }
 0x121   :  { %v2184_v46 = vadd.f32 %v2183_v42, %v2182_v39  ;;  %v2185_v47 = vpop.f32.mrb[22].mxu1  ;;  %v2122_v48 = vpop.f32.mrb[23].mxu0 }
 0x122   :  { %v2123_v49 = vadd.f32 %v2122_v48, %v2121_v44  ;;  %v2186_v50 = vpop.f32.mrb[23].mxu1 }
 0x123   :  { %v3161_v51 = vadd.f32 %v2184_v46, %v2120_v41  ;;  %v2187_v52 = vadd.f32 %v2186_v50, %v2185_v47 }
 0x125   :  { %v3163_v53 = vadd.f32 %v2187_v52, %v2123_v49 }
 0x126   :  { %v2124_v54 = vpop.f32.mrb[24].mxu0 }
 0x127   :  { %v2188_v55 = vpop.f32.mrb[24].mxu1  ;;  %v2125_v56 = vpop.f32.mrb[25].mxu0 }
 0x128   :  { %v2126_v58 = vadd.f32 %v2125_v56, %v2124_v54  ;;  %v2189_v60 = vpop.f32.mrb[25].mxu1  ;;  %v2127_v61 = vpop.f32.mrb[26].mxu0 }
 0x129   :  { %v2190_v62 = vadd.f32 %v2189_v60, %v2188_v55  ;;  %v2191_v63 = vpop.f32.mrb[26].mxu1  ;;  %v2128_v0 = vpop.f32.mrb[27].mxu0 }
 0x12a   :  { %v2129_v1 = vadd.f32 %v2128_v0, %v2127_v61  ;;  %v2192_v2 = vpop.f32.mrb[27].mxu1 }
 0x12b   :  { %v3165_v3 = vadd.f32 %v2190_v62, %v2126_v58  ;;  %v2193_v4 = vadd.f32 %v2192_v2, %v2191_v63 }
 0x12d   :  { %v3167_v5 = vadd.f32 %v2193_v4, %v2129_v1 }
 0x12e   :  { %v2130_v6 = vpop.f32.mrb[28].mxu0 }
 0x12f   :  { %v2194_v8 = vpop.f32.mrb[28].mxu1  ;;  %v2131_v10 = vpop.f32.mrb[29].mxu0 }
 0x130   :  { %v2132_v11 = vadd.f32 %v2131_v10, %v2130_v6  ;;  %v2195_v12 = vpop.f32.mrb[29].mxu1  ;;  %v2133_v13 = vpop.f32.mrb[30].mxu0 }
 0x131   :  { %v2196_v14 = vadd.f32 %v2195_v12, %v2194_v8  ;;  %v2197_v15 = vpop.f32.mrb[30].mxu1  ;;  %v2134_v16 = vpop.f32.mrb[31].mxu0 }
 0x132   :  { %v2135_v17 = vadd.f32 %v2134_v16, %v2133_v13  ;;  %v2198_v18 = vpop.f32.mrb[31].mxu1 }
 0x133   :  { %v3169_v19 = vadd.f32 %v2196_v14, %v2132_v11  ;;  %v2199_v20 = vadd.f32 %v2198_v18, %v2197_v15 }
 0x135   :  { %v3171_v22 = vadd.f32 %v2199_v20, %v2135_v17 }
 0x136   :  { %v2216_v24 = vpop.f32.mrb[32].mxu0 }
 0x137   :  { %v2280_v25 = vpop.f32.mrb[32].mxu1  ;;  %v2217_v26 = vpop.f32.mrb[33].mxu0 }
 0x138   :  { %v2218_v27 = vadd.f32 %v2217_v26, %v2216_v24  ;;  %v2281_v28 = vpop.f32.mrb[33].mxu1  ;;  %v2219_v29 = vpop.f32.mrb[34].mxu0 }
 0x139   :  { %v2282_v30 = vadd.f32 %v2281_v28, %v2280_v25  ;;  %v2283_v31 = vpop.f32.mrb[34].mxu1  ;;  %v2220_v32 = vpop.f32.mrb[35].mxu0 }
 0x13a   :  { %v1283_v33 = vadd.f32 %v2218_v27, %v3141_v43  ;;  %v2221_v34 = vadd.f32 %v2220_v32, %v2219_v29  ;;  %v2284_v36 = vpop.f32.mrb[35].mxu1 }
 0x13b   :  { %v2285_v38 = vadd.f32 %v2284_v36, %v2283_v31 }
 0x13c   :  { %v1286_v39 = vadd.f32 %v2221_v34, %v3143_v45  ;;  %v3175_v40 = vadd.f32 %v2282_v30, %v1283_v33 }
 0x13e   :  { %v2222_v41 = vpop.f32.mrb[36].mxu0  ;;  %v3177_v42 = vadd.f32 %v2285_v38, %v1286_v39 }
 0x13f   :  { %v2286_v44 = vpop.f32.mrb[36].mxu1  ;;  %v2223_v46 = vpop.f32.mrb[37].mxu0 }
 0x140   :  { %v2224_v47 = vadd.f32 %v2223_v46, %v2222_v41  ;;  %v2287_v48 = vpop.f32.mrb[37].mxu1  ;;  %v2225_v49 = vpop.f32.mrb[38].mxu0 }
 0x141   :  { %v2288_v50 = vadd.f32 %v2287_v48, %v2286_v44  ;;  %v2289_v52 = vpop.f32.mrb[38].mxu1  ;;  %v2226_v54 = vpop.f32.mrb[39].mxu0 }
 0x142   :  { %v1291_v43 = vadd.f32 %v2224_v47, %v3145_v57  ;;  %v2227_v55 = vadd.f32 %v2226_v54, %v2225_v49  ;;  %v2290_v56 = vpop.f32.mrb[39].mxu1 }
 0x143   :  { %v2291_v58 = vadd.f32 %v2290_v56, %v2289_v52 }
 0x144   :  { %v1294_v45 = vadd.f32 %v2227_v55, %v3147_v59  ;;  %v3181_v60 = vadd.f32 %v2288_v50, %v1291_v43 }
 0x146   :  { %v2228_v61 = vpop.f32.mrb[40].mxu0  ;;  %v3183_v62 = vadd.f32 %v2291_v58, %v1294_v45 }
 0x147   :  { %v2292_v63 = vpop.f32.mrb[40].mxu1  ;;  %v2229_v0 = vpop.f32.mrb[41].mxu0 }
 0x148   :  { %v2230_v1 = vadd.f32 %v2229_v0, %v2228_v61  ;;  %v2293_v2 = vpop.f32.mrb[41].mxu1  ;;  %v2231_v4 = vpop.f32.mrb[42].mxu0 }
 0x149   :  { %v2294_v6 = vadd.f32 %v2293_v2, %v2292_v63  ;;  %v2295_v8 = vpop.f32.mrb[42].mxu1  ;;  %v2232_v10 = vpop.f32.mrb[43].mxu0 }
 0x14a   :  { %v1299_v57 = vadd.f32 %v2230_v1, %v3149_v7  ;;  %v2233_v11 = vadd.f32 %v2232_v10, %v2231_v4  ;;  %v2296_v12 = vpop.f32.mrb[43].mxu1 }
 0x14b   :  { %v2297_v13 = vadd.f32 %v2296_v12, %v2295_v8 }
 0x14c   :  { %v1302_v59 = vadd.f32 %v2233_v11, %v3151_v9  ;;  %v3187_v14 = vadd.f32 %v2294_v6, %v1299_v57 }
 0x14e   :  { %v2234_v15 = vpop.f32.mrb[44].mxu0  ;;  %v3189_v16 = vadd.f32 %v2297_v13, %v1302_v59 }
 0x14f   :  { %v2298_v17 = vpop.f32.mrb[44].mxu1  ;;  %v2235_v18 = vpop.f32.mrb[45].mxu0 }
 0x150   :  { %v2236_v20 = vadd.f32 %v2235_v18, %v2234_v15  ;;  %v2299_v24 = vpop.f32.mrb[45].mxu1  ;;  %v2237_v25 = vpop.f32.mrb[46].mxu0 }
 0x151   :  { %v2300_v26 = vadd.f32 %v2299_v24, %v2298_v17  ;;  %v2301_v27 = vpop.f32.mrb[46].mxu1  ;;  %v2238_v28 = vpop.f32.mrb[47].mxu0 }
 0x152   :  { %v1307_v7 = vadd.f32 %v2236_v20, %v3153_v21  ;;  %v2239_v29 = vadd.f32 %v2238_v28, %v2237_v25  ;;  %v2302_v30 = vpop.f32.mrb[47].mxu1 }
 0x153   :  { %v2303_v31 = vadd.f32 %v2302_v30, %v2301_v27 }
 0x154   :  { %v1310_v9 = vadd.f32 %v2239_v29, %v3155_v23  ;;  %v3193_v32 = vadd.f32 %v2300_v26, %v1307_v7 }
 0x156   :  { %v2240_v33 = vpop.f32.mrb[48].mxu0  ;;  %v3195_v34 = vadd.f32 %v2303_v31, %v1310_v9 }
 0x157   :  { %v2304_v36 = vpop.f32.mrb[48].mxu1  ;;  %v2241_v38 = vpop.f32.mrb[49].mxu0 }
 0x158   :  { %v2242_v39 = vadd.f32 %v2241_v38, %v2240_v33  ;;  %v2305_v41 = vpop.f32.mrb[49].mxu1  ;;  %v2243_v44 = vpop.f32.mrb[50].mxu0 }
 0x159   :  { %v2306_v46 = vadd.f32 %v2305_v41, %v2304_v36  ;;  %v2307_v47 = vpop.f32.mrb[50].mxu1  ;;  %v2244_v48 = vpop.f32.mrb[51].mxu0 }
 0x15a   :  { %v1315_v21 = vadd.f32 %v2242_v39, %v3157_v35  ;;  %v2245_v49 = vadd.f32 %v2244_v48, %v2243_v44  ;;  %v2308_v50 = vpop.f32.mrb[51].mxu1 }
 0x15b   :  { %v2309_v52 = vadd.f32 %v2308_v50, %v2307_v47  ;;  %v3227_v50 = vld [vmem:[%s3374_s2] ss:$0 sm:$0xff] }
 0x15c   :  { %v1318_v23 = vadd.f32 %v2245_v49, %v3159_v37  ;;  %v3199_v54 = vadd.f32 %v2306_v46, %v1315_v21  ;;  %v3222_v21 = vld [vmem:[%s3373_s6] ss:$0 sm:$0xff] }
 0x15e   :  { %v2246_v43 = vpop.f32.mrb[52].mxu0  ;;  %v3201_v55 = vadd.f32 %v2309_v52, %v1318_v23 }
 0x15f   :  { %v2310_v56 = vpop.f32.mrb[52].mxu1  ;;  %v2247_v58 = vpop.f32.mrb[53].mxu0 }
 0x160   :  { %v2248_v45 = vadd.f32 %v2247_v58, %v2246_v43  ;;  %v2311_v61 = vpop.f32.mrb[53].mxu1  ;;  %v2249_v63 = vpop.f32.mrb[54].mxu0 }
 0x161   :  { %v2312_v0 = vadd.f32 %v2311_v61, %v2310_v56  ;;  %v2313_v1 = vpop.f32.mrb[54].mxu1  ;;  %v2250_v2 = vpop.f32.mrb[55].mxu0  ;;  %v3240_v56 = vld [vmem:[%s3376_s3] ss:$0 sm:$0xff] }
 0x162   :  { %v1323_v35 = vadd.f32 %v2248_v45, %v3161_v51  ;;  %v2251_v4 = vadd.f32 %v2250_v2, %v2249_v63  ;;  %v2314_v6 = vpop.f32.mrb[55].mxu1 }
 0x163   :  { %v2315_v8 = vadd.f32 %v2314_v6, %v2313_v1 }
 0x164   :  { %v1326_v37 = vadd.f32 %v2251_v4, %v3163_v53  ;;  %v3205_v10 = vadd.f32 %v2312_v0, %v1323_v35 }
 0x166   :  { %v2252_v57 = vpop.f32.mrb[56].mxu0  ;;  %v3207_v11 = vadd.f32 %v2315_v8, %v1326_v37 }
 0x167   :  { %v2316_v12 = vpop.f32.mrb[56].mxu1  ;;  %v2253_v13 = vpop.f32.mrb[57].mxu0 }
 0x168   :  { %v2254_v59 = vadd.f32 %v2253_v13, %v2252_v57  ;;  %v2317_v15 = vpop.f32.mrb[57].mxu1  ;;  %v2255_v17 = vpop.f32.mrb[58].mxu0 }
 0x169   :  { %v2318_v18 = vadd.f32 %v2317_v15, %v2316_v12  ;;  %v2319_v20 = vpop.f32.mrb[58].mxu1  ;;  %v2256_v24 = vpop.f32.mrb[59].mxu0 }
 0x16a   :  { %v1331_v51 = vadd.f32 %v2254_v59, %v3165_v3  ;;  %v2257_v25 = vadd.f32 %v2256_v24, %v2255_v17  ;;  %v2320_v26 = vpop.f32.mrb[59].mxu1 }
 0x16b   :  { %v2321_v27 = vadd.f32 %v2320_v26, %v2319_v20 }
 0x16c   :  { %v1334_v53 = vadd.f32 %v2257_v25, %v3167_v5  ;;  %v3211_v28 = vadd.f32 %v2318_v18, %v1331_v51 }
 0x16e   :  { %v2258_v7 = vpop.f32.mrb[60].mxu0  ;;  %v3213_v29 = vadd.f32 %v2321_v27, %v1334_v53 }
 0x16f   :  { %v2322_v30 = vpop.f32.mrb[60].mxu1  ;;  %v2259_v31 = vpop.f32.mrb[61].mxu0 }
 0x170   :  { %v2260_v9 = vadd.f32 %v2259_v31, %v2258_v7  ;;  %v2323_v33 = vpop.f32.mrb[61].mxu1  ;;  %v2261_v36 = vpop.f32.mrb[62].mxu0 }
 0x171   :  { %v2324_v38 = vadd.f32 %v2323_v33, %v2322_v30  ;;  %v2325_v39 = vpop.f32.mrb[62].mxu1  ;;  %v2262_v41 = vpop.f32.mrb[63].mxu0 }
 0x172   :  { %v1339_v3 = vadd.f32 %v2260_v9, %v3169_v19  ;;  %v2263_v44 = vadd.f32 %v2262_v41, %v2261_v36  ;;  %v2326_v46 = vpop.f32.mrb[63].mxu1 }
 0x173   :  { %v2327_v47 = vadd.f32 %v2326_v46, %v2325_v39 }
 0x174   :  { %v1342_v5 = vadd.f32 %v2263_v44, %v3171_v22  ;;  %v3217_v48 = vadd.f32 %v2324_v38, %v1339_v3  ;;  %v3235_v22 = vld [vmem:[%s3375_s7] ss:$0 sm:$0xff] }
 0x176   :  { %v2378_v49 = vpop.f32.mrb[64].mxu0  ;;  %v3229_v52 = vadd.f32 %v2327_v47, %v1342_v5 }
 0x177   :  { %v1485_v19 = vadd.f32 %v2378_v49, %v3181_v60  ;;  %v2410_v23 = vpop.f32.mrb[64].mxu1  ;;  %v1476_v43 = vpop.f32.mrb[65].mxu0 }
 0x178   :  { %v1819_v58 = vmul.f32 %v2410_v23, %v3222_v21  ;;  %v1477_v45 = vadd.f32 %v1476_v43, %v3175_v40  ;;  %v1747_v61 = vpop.f32.mrb[65].mxu1  ;;  %v2379_v63 = vpop.f32.mrb[66].mxu0 }
 0x179   :  { %v1548_v60 = vmul.f32 %v3227_v50, %v1485_v19  ;;  %v1817_v0 = vmul.f32 %v3222_v21, %v1747_v61  ;;  %v1488_v1 = vadd.f32 %v2379_v63, %v3183_v62  ;;  %v2411_v2 = vpop.f32.mrb[66].mxu1  ;;  %v1479_v35 = vpop.f32.mrb[67].mxu0 }
 0x17a   :  { %v1842_v4 = vadd.f32 %v3235_v22, %v1819_v58  ;;  %v1546_v6 = vmul.f32 %v3227_v50, %v1477_v45  ;;  %v1820_v8 = vmul.f32 %v2411_v2, %v3222_v21  ;;  %v1480_v37 = vadd.f32 %v1479_v35, %v3177_v42  ;;  %v1750_v57 = vpop.f32.mrb[67].mxu1 }
 0x17b   :  { %v1571_v40 = vadd.f32 %v3240_v56, %v1548_v60  ;;  %v1840_v12 = vadd.f32 %v3235_v22, %v1817_v0  ;;  %v1549_v13 = vmul.f32 %v3227_v50, %v1488_v1  ;;  %v1818_v59 = vmul.f32 %v3222_v21, %v1750_v57 }
 0x17c   :  { %v1569_v62 = vadd.f32 %v3240_v56, %v1546_v6  ;;  %v1547_v15 = vmul.f32 %v3227_v50, %v1480_v37  ;;  %v1843_v20 = vadd.f32 %v3235_v22, %v1820_v8 }
 0x17d   :  { %v1858_v17 = vadd.f32 %v1842_v4, %v1571_v40  ;;  %v1572_v18 = vadd.f32 %v3240_v56, %v1549_v13  ;;  %v1841_v51 = vadd.f32 %v3235_v22, %v1818_v59 }
 0x17e   :  { %v1856_v24 = vadd.f32 %v1840_v12, %v1569_v62  ;;  %v1570_v42 = vadd.f32 %v3240_v56, %v1547_v15  ;;  %v2382_v25 = vpop.f32.mrb[68].mxu0 }
 0x17f   :  { %v1874_v26 = vmax.f32 %v1858_v17, 0.0  ;;  %v1859_v27 = vadd.f32 %v1843_v20, %v1572_v18  ;;  %v1501_v53 = vadd.f32 %v2382_v25, %v3193_v32  ;;  %v2414_v7 = vpop.f32.mrb[68].mxu1  ;;  %v1492_v30 = vpop.f32.mrb[69].mxu0 }
 0x180   :  { %v1872_v31 = vmax.f32 %v1856_v24, 0.0  ;;  %v1857_v9 = vadd.f32 %v1841_v51, %v1570_v42  ;;  %v1823_v33 = vmul.f32 %v2414_v7, %v3222_v21  ;;  %v1493_v36 = vadd.f32 %v1492_v30, %v3187_v14  ;;  %v1763_v38 = vpop.f32.mrb[69].mxu1  ;;  %v2383_v39 = vpop.f32.mrb[70].mxu0 }
 0x181   :  { %1890 = vst [vmem:[%s3377_s8 + $0x10] sm:$0xff] %v1874_v26  ;;  %v1875_v41 = vmax.f32 %v1859_v27, 0.0  ;;  %v1552_v3 = vmul.f32 %v3227_v50, %v1501_v53  ;;  %v1821_v44 = vmul.f32 %v3222_v21, %v1763_v38  ;;  %v1504_v32 = vadd.f32 %v2383_v39, %v3195_v34  ;;  %v2415_v46 = vpop.f32.mrb[70].mxu1  ;;  %v1495_v47 = vpop.f32.mrb[71].mxu0 }
 0x182   :  { %1888 = vst [vmem:[%s3377_s8] sm:$0xff] %v1872_v31  ;;  %v1873_v14 = vmax.f32 %v1857_v9, 0.0  ;;  %v1846_v5 = vadd.f32 %v3235_v22, %v1823_v33  ;;  %v1550_v49 = vmul.f32 %v3227_v50, %v1493_v36  ;;  %v1824_v19 = vmul.f32 %v2415_v46, %v3222_v21  ;;  %v1766_v23 = vpop.f32.mrb[71].mxu1 }
 0x183   :  { %1891 = vst [vmem:[%s3377_s8 + $0x18] sm:$0xff] %v1875_v41  ;;  %v1575_v34 = vadd.f32 %v3240_v56, %v1552_v3  ;;  %v1844_v43 = vadd.f32 %v3235_v22, %v1821_v44  ;;  %v1553_v58 = vmul.f32 %v3227_v50, %v1504_v32  ;;  %v1496_v45 = vadd.f32 %v1495_v47, %v3189_v16 }
 0x184   :  { %1889 = vst [vmem:[%s3377_s8 + $0x8] sm:$0xff] %v1873_v14  ;;  %v1573_v61 = vadd.f32 %v3240_v56, %v1550_v49  ;;  %v1822_v63 = vmul.f32 %v3222_v21, %v1766_v23  ;;  %v1847_v1 = vadd.f32 %v3235_v22, %v1824_v19 }
 0x185   :  { %v1862_v60 = vadd.f32 %v1846_v5, %v1575_v34  ;;  %v1576_v0 = vadd.f32 %v3240_v56, %v1553_v58  ;;  %v1551_v2 = vmul.f32 %v3227_v50, %v1496_v45 }
 0x186   :  { %v1860_v35 = vadd.f32 %v1844_v43, %v1573_v61  ;;  %v1845_v4 = vadd.f32 %v3235_v22, %v1822_v63  ;;  %v2386_v6 = vpop.f32.mrb[72].mxu0 }
 0x187   :  { %v1878_v16 = vmax.f32 %v1862_v60, 0.0  ;;  %v1863_v8 = vadd.f32 %v1847_v1, %v1576_v0  ;;  %v1574_v37 = vadd.f32 %v3240_v56, %v1551_v2  ;;  %v1517_v57 = vadd.f32 %v2386_v6, %v3205_v10  ;;  %v2418_v40 = vpop.f32.mrb[72].mxu1  ;;  %v1508_v12 = vpop.f32.mrb[73].mxu0 }
 0x188   :  { %v1876_v13 = vmax.f32 %v1860_v35, 0.0  ;;  %v1827_v59 = vmul.f32 %v2418_v40, %v3222_v21  ;;  %v1509_v62 = vadd.f32 %v1508_v12, %v3199_v54  ;;  %v1779_v15 = vpop.f32.mrb[73].mxu1  ;;  %v2387_v17 = vpop.f32.mrb[74].mxu0 }
 0x189   :  { %1894 = vst [vmem:[%s3377_s8 + $0x30] sm:$0xff] %v1878_v16  ;;  %v1879_v18 = vmax.f32 %v1863_v8, 0.0  ;;  %v1861_v20 = vadd.f32 %v1845_v4, %v1574_v37  ;;  %v1556_v24 = vmul.f32 %v3227_v50, %v1517_v57  ;;  %v1825_v42 = vmul.f32 %v3222_v21, %v1779_v15  ;;  %v2419_v10 = vpop.f32.mrb[74].mxu1  ;;  %v1511_v51 = vpop.f32.mrb[75].mxu0 }
 0x18a   :  { %1892 = vst [vmem:[%s3377_s8 + $0x20] sm:$0xff] %v1876_v13  ;;  %v1850_v54 = vadd.f32 %v3235_v22, %v1827_v59  ;;  %v1554_v25 = vmul.f32 %v3227_v50, %v1509_v62  ;;  %v1520_v26 = vadd.f32 %v2387_v17, %v3207_v11  ;;  %v1828_v27 = vmul.f32 %v2419_v10, %v3222_v21  ;;  %v1782_v53 = vpop.f32.mrb[75].mxu1 }
 0x18b   :  { %1895 = vst [vmem:[%s3377_s8 + $0x38] sm:$0xff] %v1879_v18  ;;  %v1877_v7 = vmax.f32 %v1861_v20, 0.0  ;;  %v1579_v30 = vadd.f32 %v3240_v56, %v1556_v24  ;;  %v1848_v31 = vadd.f32 %v3235_v22, %v1825_v42  ;;  %v1512_v9 = vadd.f32 %v1511_v51, %v3201_v55 }
 0x18c   :  { %v1577_v33 = vadd.f32 %v3240_v56, %v1554_v25  ;;  %v1557_v36 = vmul.f32 %v3227_v50, %v1520_v26  ;;  %v1826_v11 = vmul.f32 %v3222_v21, %v1782_v53  ;;  %v1851_v44 = vadd.f32 %v3235_v22, %v1828_v27 }
 0x18d   :  { %1893 = vst [vmem:[%s3377_s8 + $0x28] sm:$0xff] %v1877_v7  ;;  %v1866_v38 = vadd.f32 %v1850_v54, %v1579_v30  ;;  %v1555_v39 = vmul.f32 %v3227_v50, %v1512_v9 }
 0x18e   :  { %v1864_v41 = vadd.f32 %v1848_v31, %v1577_v33  ;;  %v1580_v3 = vadd.f32 %v3240_v56, %v1557_v36  ;;  %v2390_v32 = vpop.f32.mrb[76].mxu0  ;;  %v1849_v47 = vadd.f32 %v3235_v22, %v1826_v11 }
 0x18f   :  { %v1882_v55 = vmax.f32 %v1866_v38, 0.0  ;;  %v1578_v46 = vadd.f32 %v3240_v56, %v1555_v39  ;;  %v1533_v14 = vadd.f32 %v2390_v32, %v3217_v48  ;;  %v2422_v5 = vpop.f32.mrb[76].mxu1  ;;  %v1524_v49 = vpop.f32.mrb[77].mxu0 }
 0x190   :  { %v1880_v19 = vmax.f32 %v1864_v41, 0.0  ;;  %v1867_v23 = vadd.f32 %v1851_v44, %v1580_v3  ;;  %v1831_v34 = vmul.f32 %v2422_v5, %v3222_v21  ;;  %v1525_v43 = vadd.f32 %v1524_v49, %v3211_v28  ;;  %v1795_v58 = vpop.f32.mrb[77].mxu1  ;;  %v2391_v45 = vpop.f32.mrb[78].mxu0 }
 0x191   :  { %1898 = vst [vmem:[%s3377_s8 + $0x50] sm:$0xff] %v1882_v55  ;;  %v1865_v61 = vadd.f32 %v1849_v47, %v1578_v46  ;;  %v1560_v63 = vmul.f32 %v3227_v50, %v1533_v14  ;;  %v1829_v60 = vmul.f32 %v3222_v21, %v1795_v58  ;;  %v1536_v48 = vadd.f32 %v2391_v45, %v3229_v52  ;;  %v2423_v0 = vpop.f32.mrb[78].mxu1  ;;  %v1527_v1 = vpop.f32.mrb[79].mxu0 }
 0x192   :  { %1896 = vst [vmem:[%s3377_s8 + $0x40] sm:$0xff] %v1880_v19  ;;  %v1883_v28 = vmax.f32 %v1867_v23, 0.0  ;;  %v1854_v2 = vadd.f32 %v3235_v22, %v1831_v34  ;;  %v1558_v35 = vmul.f32 %v3227_v50, %v1525_v43  ;;  %v1832_v4 = vmul.f32 %v2423_v0, %v3222_v21  ;;  %v1798_v6 = vpop.f32.mrb[79].mxu1 }
 0x193   :  { %v1881_v16 = vmax.f32 %v1865_v61, 0.0  ;;  %v1583_v8 = vadd.f32 %v3240_v56, %v1560_v63  ;;  %v1852_v37 = vadd.f32 %v3235_v22, %v1829_v60  ;;  %v1561_v52 = vmul.f32 %v3227_v50, %v1536_v48 }
 0x194   :  { %1899 = vst [vmem:[%s3377_s8 + $0x58] sm:$0xff] %v1883_v28  ;;  %v1581_v57 = vadd.f32 %v3240_v56, %v1558_v35  ;;  %v1528_v40 = vadd.f32 %v1527_v1, %v3213_v29  ;;  %v1830_v12 = vmul.f32 %v3222_v21, %v1798_v6  ;;  %v1855_v62 = vadd.f32 %v3235_v22, %v1832_v4 }
 0x195   :  { %1897 = vst [vmem:[%s3377_s8 + $0x48] sm:$0xff] %v1881_v16  ;;  %v1870_v13 = vadd.f32 %v1854_v2, %v1583_v8  ;;  %v1584_v59 = vadd.f32 %v3240_v56, %v1561_v52 }
 0x196   :  { %v1868_v15 = vadd.f32 %v1852_v37, %v1581_v57  ;;  %v1559_v17 = vmul.f32 %v3227_v50, %v1528_v40  ;;  %v1853_v29 = vadd.f32 %v3235_v22, %v1830_v12 }
 0x197   :  { %v1886_v18 = vmax.f32 %v1870_v13, 0.0  ;;  %v1871_v20 = vadd.f32 %v1855_v62, %v1584_v59 }
 0x198   :  { %v1884_v24 = vmax.f32 %v1868_v15, 0.0  ;;  %v1582_v42 = vadd.f32 %v3240_v56, %v1559_v17 }
 0x199   :  { %1902 = vst [vmem:[%s3377_s8 + $0x70] sm:$0xff] %v1886_v18  ;;  %v1887_v21 = vmax.f32 %v1871_v20, 0.0 }
 0x19a   :  { %1900 = vst [vmem:[%s3377_s8 + $0x60] sm:$0xff] %v1884_v24  ;;  %v1869_v10 = vadd.f32 %v1853_v29, %v1582_v42 }
 0x19b   :  { %1903 = vst [vmem:[%s3377_s8 + $0x78] sm:$0xff] %v1887_v21 }
 0x19c   :  { %v1885_v50 = vmax.f32 %v1869_v10, 0.0 }
 0x19e   :  { %1901 = vst [vmem:[%s3377_s8 + $0x68] sm:$0xff] %v1885_v50 }

</bundles_post_ra>
